<compile_context>
chip_gen: v5e
topology: v5e:2x2
jax: 0.10.0
libtpu: 0.0.40
codegen_flags: <defaults>
</compile_context>

<pallas_src>
import functools

import jax
import jax.numpy as jnp
import numpy as np
from jax.experimental import pallas as pl
from jax.experimental.pallas import tpu as pltpu

# ----------------------------------------------------------------------------
# Model configuration (small, fixed shapes)
# ----------------------------------------------------------------------------
IMG_H = IMG_W = 16
C_IN = 3             # BatchNorm2d(3) input channels
CPAD = 8             # input channels zero-padded to 8 -> lane-dense (B*H, 128)
C1 = 8               # conv1 output channels  -> conv1 lane width 16*8  = 128
C2 = 16              # conv2 output channels  -> conv2 lane width 8*16  = 128
EMB = 32             # embedding size per quadrant feature -> 4*32 = 128 lanes
NUM_CLASSES = 10     # per-head classes (zero-padded to EMB lanes in the kernel)
H2, W2 = IMG_H // 2, IMG_W // 2          # after pool1: 8 x 8
H3, W3 = H2 // 2, W2 // 2                # after pool2: 4 x 4
BN_EPS = 1e-5
LANES = 128

# f32 misc slab layout (row offsets)
ROW_S = 0                       # (W*CPAD, CPAD) channel-sum selector, lanes 0:CPAD
ROW_ST = IMG_W * CPAD           # 128: (CPAD, W*CPAD) channel-broadcast selector
ROW_VEC = ROW_ST + CPAD         # 136: (8, 128) slab of all 1-row vectors
VEC_GAMMA, VEC_BETA, VEC_B1, VEC_B2, VEC_BP, VEC_BH = range(6)
F32_ROWS = ROW_VEC + 8          # 144


# ----------------------------------------------------------------------------
# The single fused Pallas kernel (gridless; everything batched, zero scratch)
# ----------------------------------------------------------------------------
def _fused_forward_kernel(x_ref, f_ref, w_ref, out_ref, *, batch, wlayout):
    """BN -> conv3x3+ReLU -> 2x2 maxpool -> conv3x3+ReLU -> 2x2 maxpool ->
    4 quadrant projections (+ReLU) -> 4 heads. All GEMMs batched over B."""
    f32 = jnp.float32
    bf16 = jnp.bfloat16
    inv_n = 1.0 / float(batch * IMG_H * IMG_W)

    def W(name):
        off, nrows, ncols = wlayout[name]         # static python ints
        return w_ref[off:off + nrows, 0:ncols]

    def dot(a, b):
        return jnp.dot(a, b, preferred_element_type=f32)

    # ---- misc slab slices (BN selectors + bias rows) ----
    s_mat = f_ref[ROW_S:ROW_S + IMG_W * CPAD, 0:CPAD]      # (128, 8)   columns->channels
    st_mat = f_ref[ROW_ST:ROW_ST + CPAD, :]                # (8, 128)   channels->columns
    vecs = f_ref[ROW_VEC:ROW_VEC + 8, :]                   # (8, 128)
    gamma_cols = vecs[VEC_GAMMA:VEC_GAMMA + 1, :]
    beta_cols = vecs[VEC_BETA:VEC_BETA + 1, :]
    b1_row = vecs[VEC_B1:VEC_B1 + 1, :]
    b2_row = vecs[VEC_B2:VEC_B2 + 1, :]
    bp_row = vecs[VEC_BP:VEC_BP + 1, :]
    bh_row = vecs[VEC_BH:VEC_BH + 1, :]

    # ---- BatchNorm2d (training-mode batch stats, mean-centred variance) ----
    x = x_ref[...]                                          # (B*H, 128) f32
    col_sum = jnp.sum(x, axis=0, keepdims=True)             # (1, 128)
    mean = dot(col_sum, s_mat) * inv_n                      # (1, 8)
    mean_cols = dot(mean, st_mat)                           # (1, 128)
    xc = x - mean_cols
    var = dot(jnp.sum(xc * xc, axis=0, keepdims=True), s_mat) * inv_n   # (1, 8)
    scale_cols = dot(jax.lax.rsqrt(var + BN_EPS), st_mat)   # (1, 128)
    xn = (xc * scale_cols * gamma_cols + beta_cols).astype(bf16)        # (B*H, 128)

    m1 = batch * IMG_H          # 128
    m2 = batch * H2             # 64
    m3 = batch * H3             # 32

    # ---- conv1: y-shift selector GEMM + 3 banded GEMMs over the whole batch ----
    sh1 = dot(W("t1"), xn).astype(bf16)                     # (3*B*H, 128), exact copies
    a1 = dot(sh1[0:m1], W("wb1_0"))
    a1 = a1 + dot(sh1[m1:2 * m1], W("wb1_1"))
    a1 = a1 + dot(sh1[2 * m1:3 * m1], W("wb1_2"))
    a1 = jnp.maximum(a1 + b1_row, 0.0).astype(bf16)         # (B*H, W*C1) = (128, 128)

    # ---- 2x2 max pool #1: merged even/odd row & column selector GEMMs + max ----
    r1cat = dot(W("rsel1"), a1)                             # (2*B*H2, 128)
    r1 = jnp.maximum(r1cat[0:m2], r1cat[m2:2 * m2]).astype(bf16)        # (B*H2, 128)
    p1cat = dot(r1, W("csel1"))                             # (B*H2, 2*W2*C1) = (64, 128)
    half1 = W2 * C1
    p1 = jnp.maximum(p1cat[:, 0:half1], p1cat[:, half1:2 * half1]).astype(bf16)  # (64, 64)

    # ---- conv2 + ReLU ----
    sh2 = dot(W("t2"), p1).astype(bf16)                     # (3*B*H2, 64)
    a2 = dot(sh2[0:m2], W("wb2_0"))
    a2 = a2 + dot(sh2[m2:2 * m2], W("wb2_1"))
    a2 = a2 + dot(sh2[2 * m2:3 * m2], W("wb2_2"))
    a2 = jnp.maximum(a2 + b2_row, 0.0).astype(bf16)         # (B*H2, W2*C2) = (64, 128)

    # ---- 2x2 max pool #2 (row selector emits y-major, batch-minor rows) ----
    r2cat = dot(W("rsel2"), a2)                             # (2*B*H3, 128)
    r2 = jnp.maximum(r2cat[0:m3], r2cat[m3:2 * m3]).astype(bf16)        # (B*H3, 128)
    p2cat = dot(r2, W("csel2"))                             # (B*H3, 2*W3*C2) = (32, 128)
    half2 = W3 * C2
    p2 = jnp.maximum(p2cat[:, 0:half2], p2cat[:, half2:2 * half2]).astype(bf16)  # (32, 64)

    # ---- 4 quadrant projections, batched (M = B), packed lane-dense 128 wide ----
    feat = dot(p2[0:batch], W("wp_0"))                      # rows of p2 are y-major
    for r in range(1, H3):
        feat = feat + dot(p2[r * batch:(r + 1) * batch], W(f"wp_{r}"))
    feat = jnp.maximum(feat + bp_row, 0.0).astype(bf16)     # (B, 4*EMB) = (B, 128)

    # ---- 4 heads packed block-diagonally; ONE dense (B, 128) store ----
    out_ref[...] = dot(feat, W("wh")) + bh_row


# ----------------------------------------------------------------------------
# One-time host-side packing: banded conv operands, shift / pool selectors,
# packed projections & heads, consolidated into 2 slabs (1 f32 + 1 bf16).
# ----------------------------------------------------------------------------
def _yshift_selector(batch, h):
    """(3*batch*h, batch*h): rows dy*batch*h + b*h + y pick row b*h + (y+dy-1)
    of the per-batch block (zero when out of range == SAME y-padding)."""
    sel = np.zeros((3 * batch * h, batch * h), np.float32)
    for dy in range(3):
        for b in range(batch):
            for y in range(h):
                src = y + dy - 1
                if 0 <= src < h:
                    sel[dy * batch * h + b * h + y, b * h + src] = 1.0
    return sel


def _row_pool_selector(batch, h_in, batch_major):
    """Merged even/odd 2x2-pool row selector, (2*batch*h_out, batch*h_in).
    batch_major=False emits y-major/batch-minor rows (groups the pooled rows
    for the packed quadrant projection)."""
    h_out = h_in // 2
    sel = np.zeros((2 * batch * h_out, batch * h_in), np.float32)
    for half in range(2):
        for b in range(batch):
            for yo in range(h_out):
                if batch_major:
                    row = half * batch * h_out + b * h_out + yo
                else:
                    row = half * batch * h_out + yo * batch + b
                sel[row, b * h_in + 2 * yo + half] = 1.0
    return sel


def _col_pool_selector(w_in, ch):
    """Merged even/odd 2x2-pool column selector, (w_in*ch, 2*w_out*ch)."""
    w_out = w_in // 2
    sel = np.zeros((w_in * ch, 2 * w_out * ch), np.float32)
    for half in range(2):
        for xo in range(w_out):
            for c in range(ch):
                sel[(2 * xo + half) * ch + c, half * w_out * ch + xo * ch + c] = 1.0
    return sel


def _banded_conv(w_hwio, width, cin_pad):
    """(3,3,cin,cout) HWIO weights -> (3, width*cin_pad, width*cout) banded GEMM
    operands; x-direction SAME zero padding is folded in by dropping taps."""
    kh, kw, cin, cout = w_hwio.shape
    w = np.asarray(w_hwio, np.float32)
    banded = np.zeros((kh, width * cin_pad, width * cout), np.float32)
    for dy in range(kh):
        for xo in range(width):
            for dx in range(kw):
                xi = xo + dx - kw // 2
                if 0 <= xi < width:
                    banded[dy, xi * cin_pad:xi * cin_pad + cin,
                           xo * cout:(xo + 1) * cout] = w[dy, dx]
    return banded


def prepare_packed_params(params, batch):
    assert batch % 8 == 0, "keep batch a multiple of 8 (full sublane output tile)"
    f = lambda a: np.asarray(a, np.float32)

    # ---------------- f32 misc slab: BN selectors + all (1,128) rows ----------
    f32slab = np.zeros((F32_ROWS, LANES), np.float32)
    for x in range(IMG_W):
        for c in range(CPAD):
            f32slab[ROW_S + x * CPAD + c, c] = 1.0          # S : columns -> channels
            f32slab[ROW_ST + c, x * CPAD + c] = 1.0         # S^T: channels -> columns
    gamma, beta = f(params["bn_gamma"]), f(params["bn_beta"])
    for x in range(IMG_W):
        f32slab[ROW_VEC + VEC_GAMMA, x * CPAD:x * CPAD + C_IN] = gamma
        f32slab[ROW_VEC + VEC_BETA, x * CPAD:x * CPAD + C_IN] = beta
    f32slab[ROW_VEC + VEC_B1] = np.tile(f(params["b1"]), IMG_W)          # x*C1 + o
    f32slab[ROW_VEC + VEC_B2] = np.tile(f(params["b2"]), W2)             # x*C2 + o
    f32slab[ROW_VEC + VEC_BP] = np.concatenate([f(b) for b in params["bp"]])
    bh_row = np.zeros((LANES,), np.float32)
    for q in range(4):
        bh_row[q * EMB:q * EMB + NUM_CLASSES] = f(params["bh"][q])
    f32slab[ROW_VEC + VEC_BH] = bh_row

    # ---------------- bf16 weight / selector mega-slab ------------------------
    pieces, layout = [], {}

    def add(name, arr):
        arr = np.asarray(arr, np.float32)
        off = sum(p.shape[0] for p in pieces)
        layout[name] = (off, arr.shape[0], arr.shape[1])
        if arr.shape[1] < LANES:
            arr = np.pad(arr, ((0, 0), (0, LANES - arr.shape[1])))
        pieces.append(arr)

    add("t1", _yshift_selector(batch, IMG_H))
    wb1 = _banded_conv(f(params["w1"]), IMG_W, CPAD)
    for dy in range(3):
        add(f"wb1_{dy}", wb1[dy])
    add("rsel1", _row_pool_selector(batch, IMG_H, batch_major=True))
    add("csel1", _col_pool_selector(IMG_W, C1))
    add("t2", _yshift_selector(batch, H2))
    wb2 = _banded_conv(f(params["w2"]), W2, C1)
    for dy in range(3):
        add(f"wb2_{dy}", wb2[dy])
    add("rsel2", _row_pool_selector(batch, H2, batch_major=False))
    add("csel2", _col_pool_selector(W2, C2))

    # Packed quadrant projections: pooled row r / column block xb hit their
    # quadrant's weights; the 4 quads' outputs sit side by side (128 lanes).
    wp = [f(w) for w in params["wp"]]
    wp_pack = np.zeros((H3, W3 * C2, 4 * EMB), np.float32)
    for r in range(H3):
        qy, yl = divmod(r, 2)
        for xb in range(W3):
            qx, xl = divmod(xb, 2)
            quad = qy * 2 + qx
            src = yl * (2 * C2) + xl * C2                   # (y_local, x_local, c)
            wp_pack[r, xb * C2:(xb + 1) * C2,
                    quad * EMB:(quad + 1) * EMB] = wp[quad][src:src + C2, :]
    for r in range(H3):
        add(f"wp_{r}", wp_pack[r])

    # Packed heads: block-diagonal, classes zero-padded to EMB lanes.
    wh_pack = np.zeros((4 * EMB, 4 * EMB), np.float32)
    for q in range(4):
        wh_pack[q * EMB:(q + 1) * EMB,
                q * EMB:q * EMB + NUM_CLASSES] = f(params["wh"][q])
    add("wh", wh_pack)

    wslab = np.concatenate(pieces, axis=0)
    if wslab.shape[0] % 8:
        wslab = np.pad(wslab, ((0, 8 - wslab.shape[0] % 8), (0, 0)))

    return {
        "f32slab": jnp.asarray(f32slab, jnp.float32),
        "wslab": jnp.asarray(wslab, jnp.bfloat16),   # bf16 MXU operands
        "layout": layout,                            # static python offsets
    }


# ----------------------------------------------------------------------------
# Forward wrapper: ONE pallas_call with 3 consolidated operands.
# ----------------------------------------------------------------------------
def fused_forward(packed, images_nchw):
    b, c, h, w = images_nchw.shape
    assert (c, h, w) == (C_IN, IMG_H, IMG_W)
    assert b % 8 == 0
    # NCHW -> NHWC, zero-pad channels 3->8, flatten to lane-dense (B*H, 128) f32.
    x = jnp.transpose(images_nchw.astype(jnp.float32), (0, 2, 3, 1))
    x = jnp.pad(x, ((0, 0), (0, 0), (0, 0), (0, CPAD - C_IN)))
    x2d = x.reshape(b * h, w * CPAD)

    kernel = functools.partial(_fused_forward_kernel, batch=b,
                               wlayout=packed["layout"])
    out = pl.pallas_call(
        kernel,
        out_shape=jax.ShapeDtypeStruct((b, 4 * EMB), jnp.float32),
        in_specs=[
            pl.BlockSpec(x2d.shape, lambda: (0, 0)),
            pl.BlockSpec(packed["f32slab"].shape, lambda: (0, 0)),
            pl.BlockSpec(packed["wslab"].shape, lambda: (0, 0)),
        ],
        out_specs=pl.BlockSpec((b, 4 * EMB), lambda: (0, 0)),
        compiler_params=pltpu.CompilerParams(vmem_limit_bytes=32 * 1024 * 1024),
    )(x2d, packed["f32slab"], packed["wslab"])

    # the 4 head outputs live in lanes [q*EMB, q*EMB + NUM_CLASSES)
    return [out[:, q * EMB:q * EMB + NUM_CLASSES] for q in range(4)]


# ----------------------------------------------------------------------------
# Deterministic parameter init + pure-JAX reference (for validation)
# ----------------------------------------------------------------------------
def init_params(key):
    ks = jax.random.split(key, 20)
    patch_dim = 2 * 2 * C2
    return {
        "bn_gamma": jnp.ones((C_IN,), jnp.float32),
        "bn_beta": jnp.zeros((C_IN,), jnp.float32),
        "w1": 0.1 * jax.random.normal(ks[0], (3, 3, C_IN, C1), jnp.float32),
        "b1": 0.01 * jax.random.normal(ks[1], (C1,), jnp.float32),
        "w2": 0.1 * jax.random.normal(ks[2], (3, 3, C1, C2), jnp.float32),
        "b2": 0.01 * jax.random.normal(ks[3], (C2,), jnp.float32),
        "wp": [0.1 * jax.random.normal(ks[4 + i], (patch_dim, EMB), jnp.float32)
               for i in range(4)],
        "bp": [0.01 * jax.random.normal(ks[8 + i], (EMB,), jnp.float32)
               for i in range(4)],
        "wh": [0.1 * jax.random.normal(ks[12 + i], (EMB, NUM_CLASSES), jnp.float32)
               for i in range(4)],
        "bh": [0.01 * jax.random.normal(ks[16 + i], (NUM_CLASSES,), jnp.float32)
               for i in range(4)],
    }


def reference_forward(params, images_nchw):
    """Pure-JAX/XLA reference of the same forward pass (f32, HIGHEST precision)."""
    x = images_nchw.astype(jnp.float32)
    mean = jnp.mean(x, axis=(0, 2, 3), keepdims=True)
    var = jnp.mean(jnp.square(x - mean), axis=(0, 2, 3), keepdims=True)
    x = (x - mean) * jax.lax.rsqrt(var + BN_EPS)
    x = x * params["bn_gamma"].reshape(1, -1, 1, 1) + params["bn_beta"].reshape(1, -1, 1, 1)
    h = jnp.transpose(x, (0, 2, 3, 1))                      # NHWC

    dn = ("NHWC", "HWIO", "NHWC")
    hp = jax.lax.Precision.HIGHEST
    h = jax.nn.relu(jax.lax.conv_general_dilated(
        h, params["w1"], (1, 1), "SAME", dimension_numbers=dn, precision=hp)
        + params["b1"])
    b = h.shape[0]
    h = h.reshape(b, H2, 2, W2, 2, C1).max(axis=(2, 4))
    h = jax.nn.relu(jax.lax.conv_general_dilated(
        h, params["w2"], (1, 1), "SAME", dimension_numbers=dn, precision=hp)
        + params["b2"])
    h = h.reshape(b, H3, 2, W3, 2, C2).max(axis=(2, 4))
    quads = [h[:, :2, :2, :], h[:, :2, 2:, :], h[:, 2:, :2, :], h[:, 2:, 2:, :]]
    feats = [jax.nn.relu(jnp.dot(q.reshape(b, -1), params["wp"][i], precision=hp)
                         + params["bp"][i]) for i, q in enumerate(quads)]
    return [jnp.dot(feats[i], params["wh"][i], precision=hp) + params["bh"][i]
            for i in range(4)]


# ----------------------------------------------------------------------------

if __name__ == "__main__":
    key = jax.random.PRNGKey(0)
    k_img, k_par = jax.random.split(key)

    B = 8  # multiple of 8: full sublane tile for the (B, 128) output block
    images = jax.random.normal(k_img, (B, C_IN, IMG_H, IMG_W), jnp.float32)  # NCHW
    params = init_params(k_par)
    packed = prepare_packed_params(params, B)     # one-time weight repacking

    fwd = jax.jit(functools.partial(fused_forward, packed))
    outputs = fwd(images)
    outputs = [jax.block_until_ready(o) for o in outputs]

    assert len(outputs) == 4
    assert all(o.shape == (B, NUM_CLASSES) for o in outputs)
    assert all(bool(jnp.all(jnp.isfinite(o))) for o in outputs)

    # validate the fused bf16-operand kernel against the f32 HIGHEST reference
    refs = reference_forward(params, images)
    for got, want in zip(outputs, refs):
        err = float(jnp.max(jnp.abs(got - want)))
        assert jnp.allclose(got, want, rtol=1e-1, atol=5e-2), err

    print("KERNEL_OK")
</pallas_src>

<mosaic_0001>
module attributes {stable_mosaic.version = 11 : i64} {
  func.func @_fused_forward_kernel(%arg0: memref<128x128xf32, #tpu.memory_space<vmem>>, %arg1: memref<144x128xf32, #tpu.memory_space<vmem>>, %arg2: memref<1984x128xbf16, #tpu.memory_space<vmem>>, %arg3: memref<8x128xf32, #tpu.memory_space<vmem>>) attributes {dimension_semantics = [], scalar_prefetch = 0 : i64, scratch_operands = 0 : i64, tpu.core_type = #tpu.core_type<tc>} {
    %c0 = arith.constant 0 : index
    %c0_0 = arith.constant 0 : index
    %0 = vector.load %arg1[%c0, %c0_0] : memref<144x128xf32, #tpu.memory_space<vmem>>, vector<128x8xf32>
    %c128 = arith.constant 128 : index
    %c0_1 = arith.constant 0 : index
    %1 = vector.load %arg1[%c128, %c0_1] : memref<144x128xf32, #tpu.memory_space<vmem>>, vector<8x128xf32>
    %c136 = arith.constant 136 : index
    %c0_2 = arith.constant 0 : index
    %2 = vector.load %arg1[%c136, %c0_2] : memref<144x128xf32, #tpu.memory_space<vmem>>, vector<8x128xf32>
    %3 = vector.extract_strided_slice %2 {offsets = [0, 0], sizes = [1, 128], strides = [1, 1]} : vector<8x128xf32> to vector<1x128xf32>
    %4 = vector.extract_strided_slice %2 {offsets = [1, 0], sizes = [1, 128], strides = [1, 1]} : vector<8x128xf32> to vector<1x128xf32>
    %5 = vector.extract_strided_slice %2 {offsets = [2, 0], sizes = [1, 128], strides = [1, 1]} : vector<8x128xf32> to vector<1x128xf32>
    %6 = vector.extract_strided_slice %2 {offsets = [3, 0], sizes = [1, 128], strides = [1, 1]} : vector<8x128xf32> to vector<1x128xf32>
    %7 = vector.extract_strided_slice %2 {offsets = [4, 0], sizes = [1, 128], strides = [1, 1]} : vector<8x128xf32> to vector<1x128xf32>
    %8 = vector.extract_strided_slice %2 {offsets = [5, 0], sizes = [1, 128], strides = [1, 1]} : vector<8x128xf32> to vector<1x128xf32>
    %c0_3 = arith.constant 0 : index
    %c0_4 = arith.constant 0 : index
    %9 = vector.load %arg0[%c0_3, %c0_4] : memref<128x128xf32, #tpu.memory_space<vmem>>, vector<128x128xf32>
    %cst = arith.constant dense<0.000000e+00> : vector<128xf32>
    %10 = vector.multi_reduction <add>, %9, %cst [0] : vector<128x128xf32> to vector<128xf32>
    %11 = vector.shape_cast %10 : vector<128xf32> to vector<1x128xf32>
    %cst_5 = arith.constant dense<0.000000e+00> : vector<1x8xf32>
    %12 = tpu.matmul %11, %0, %cst_5 {dimension_numbers = #tpu.dot_dimension_numbers<[1], [0], [0], [1], [0, 0, 1, 1], [], []>} : vector<1x128xf32>, vector<128x8xf32>, vector<1x8xf32> -> vector<1x8xf32>
    %cst_6 = arith.constant 4.8828125E-4 : f32
    %13 = vector.broadcast %cst_6 : f32 to vector<1x8xf32>
    %14 = arith.mulf %12, %13 : vector<1x8xf32>
    %cst_7 = arith.constant dense<0.000000e+00> : vector<1x128xf32>
    %15 = tpu.matmul %14, %1, %cst_7 {dimension_numbers = #tpu.dot_dimension_numbers<[1], [0], [0], [1], [0, 0, 1, 1], [], []>} : vector<1x8xf32>, vector<8x128xf32>, vector<1x128xf32> -> vector<1x128xf32>
    %16 = vector.broadcast %15 : vector<1x128xf32> to vector<128x128xf32>
    %17 = arith.subf %9, %16 : vector<128x128xf32>
    %18 = arith.mulf %17, %17 : vector<128x128xf32>
    %cst_8 = arith.constant dense<0.000000e+00> : vector<128xf32>
    %19 = vector.multi_reduction <add>, %18, %cst_8 [0] : vector<128x128xf32> to vector<128xf32>
    %20 = vector.shape_cast %19 : vector<128xf32> to vector<1x128xf32>
    %cst_9 = arith.constant dense<0.000000e+00> : vector<1x8xf32>
    %21 = tpu.matmul %20, %0, %cst_9 {dimension_numbers = #tpu.dot_dimension_numbers<[1], [0], [0], [1], [0, 0, 1, 1], [], []>} : vector<1x128xf32>, vector<128x8xf32>, vector<1x8xf32> -> vector<1x8xf32>
    %cst_10 = arith.constant 4.8828125E-4 : f32
    %22 = vector.broadcast %cst_10 : f32 to vector<1x8xf32>
    %23 = arith.mulf %21, %22 : vector<1x8xf32>
    %cst_11 = arith.constant 9.99999974E-6 : f32
    %24 = vector.broadcast %cst_11 : f32 to vector<1x8xf32>
    %25 = arith.addf %23, %24 : vector<1x8xf32>
    %26 = math.rsqrt %25 : vector<1x8xf32>
    %cst_12 = arith.constant dense<0.000000e+00> : vector<1x128xf32>
    %27 = tpu.matmul %26, %1, %cst_12 {dimension_numbers = #tpu.dot_dimension_numbers<[1], [0], [0], [1], [0, 0, 1, 1], [], []>} : vector<1x8xf32>, vector<8x128xf32>, vector<1x128xf32> -> vector<1x128xf32>
    %28 = vector.broadcast %27 : vector<1x128xf32> to vector<128x128xf32>
    %29 = arith.mulf %17, %28 : vector<128x128xf32>
    %30 = vector.broadcast %3 : vector<1x128xf32> to vector<128x128xf32>
    %31 = arith.mulf %29, %30 : vector<128x128xf32>
    %32 = vector.broadcast %4 : vector<1x128xf32> to vector<128x128xf32>
    %33 = arith.addf %31, %32 : vector<128x128xf32>
    %34 = arith.truncf %33 : vector<128x128xf32> to vector<128x128xbf16>
    %c0_13 = arith.constant 0 : index
    %c0_14 = arith.constant 0 : index
    %35 = vector.load %arg2[%c0_13, %c0_14] : memref<1984x128xbf16, #tpu.memory_space<vmem>>, vector<384x128xbf16>
    %cst_15 = arith.constant dense<0.000000e+00> : vector<384x128xf32>
    %36 = tpu.matmul %35, %34, %cst_15 {dimension_numbers = #tpu.dot_dimension_numbers<[1], [0], [0], [1], [0, 0, 1, 1], [], []>} : vector<384x128xbf16>, vector<128x128xbf16>, vector<384x128xf32> -> vector<384x128xf32>
    %37 = arith.truncf %36 : vector<384x128xf32> to vector<384x128xbf16>
    %38 = vector.extract_strided_slice %37 {offsets = [0, 0], sizes = [128, 128], strides = [1, 1]} : vector<384x128xbf16> to vector<128x128xbf16>
    %c384 = arith.constant 384 : index
    %c0_16 = arith.constant 0 : index
    %39 = vector.load %arg2[%c384, %c0_16] : memref<1984x128xbf16, #tpu.memory_space<vmem>>, vector<128x128xbf16>
    %cst_17 = arith.constant dense<0.000000e+00> : vector<128x128xf32>
    %40 = tpu.matmul %38, %39, %cst_17 {dimension_numbers = #tpu.dot_dimension_numbers<[1], [0], [0], [1], [0, 0, 1, 1], [], []>} : vector<128x128xbf16>, vector<128x128xbf16>, vector<128x128xf32> -> vector<128x128xf32>
    %41 = vector.extract_strided_slice %37 {offsets = [128, 0], sizes = [128, 128], strides = [1, 1]} : vector<384x128xbf16> to vector<128x128xbf16>
    %c512 = arith.constant 512 : index
    %c0_18 = arith.constant 0 : index
    %42 = vector.load %arg2[%c512, %c0_18] : memref<1984x128xbf16, #tpu.memory_space<vmem>>, vector<128x128xbf16>
    %cst_19 = arith.constant dense<0.000000e+00> : vector<128x128xf32>
    %43 = tpu.matmul %41, %42, %cst_19 {dimension_numbers = #tpu.dot_dimension_numbers<[1], [0], [0], [1], [0, 0, 1, 1], [], []>} : vector<128x128xbf16>, vector<128x128xbf16>, vector<128x128xf32> -> vector<128x128xf32>
    %44 = arith.addf %40, %43 : vector<128x128xf32>
    %45 = vector.extract_strided_slice %37 {offsets = [256, 0], sizes = [128, 128], strides = [1, 1]} : vector<384x128xbf16> to vector<128x128xbf16>
    %c640 = arith.constant 640 : index
    %c0_20 = arith.constant 0 : index
    %46 = vector.load %arg2[%c640, %c0_20] : memref<1984x128xbf16, #tpu.memory_space<vmem>>, vector<128x128xbf16>
    %cst_21 = arith.constant dense<0.000000e+00> : vector<128x128xf32>
    %47 = tpu.matmul %45, %46, %cst_21 {dimension_numbers = #tpu.dot_dimension_numbers<[1], [0], [0], [1], [0, 0, 1, 1], [], []>} : vector<128x128xbf16>, vector<128x128xbf16>, vector<128x128xf32> -> vector<128x128xf32>
    %48 = arith.addf %44, %47 : vector<128x128xf32>
    %49 = vector.broadcast %5 : vector<1x128xf32> to vector<128x128xf32>
    %50 = arith.addf %48, %49 : vector<128x128xf32>
    %cst_22 = arith.constant 0.000000e+00 : f32
    %51 = vector.broadcast %cst_22 : f32 to vector<128x128xf32>
    %52 = arith.maximumf %50, %51 : vector<128x128xf32>
    %53 = arith.truncf %52 : vector<128x128xf32> to vector<128x128xbf16>
    %c768 = arith.constant 768 : index
    %c0_23 = arith.constant 0 : index
    %54 = vector.load %arg2[%c768, %c0_23] : memref<1984x128xbf16, #tpu.memory_space<vmem>>, vector<128x128xbf16>
    %cst_24 = arith.constant dense<0.000000e+00> : vector<128x128xf32>
    %55 = tpu.matmul %54, %53, %cst_24 {dimension_numbers = #tpu.dot_dimension_numbers<[1], [0], [0], [1], [0, 0, 1, 1], [], []>} : vector<128x128xbf16>, vector<128x128xbf16>, vector<128x128xf32> -> vector<128x128xf32>
    %56 = vector.extract_strided_slice %55 {offsets = [0, 0], sizes = [64, 128], strides = [1, 1]} : vector<128x128xf32> to vector<64x128xf32>
    %57 = vector.extract_strided_slice %55 {offsets = [64, 0], sizes = [64, 128], strides = [1, 1]} : vector<128x128xf32> to vector<64x128xf32>
    %58 = arith.maximumf %56, %57 : vector<64x128xf32>
    %59 = arith.truncf %58 : vector<64x128xf32> to vector<64x128xbf16>
    %c896 = arith.constant 896 : index
    %c0_25 = arith.constant 0 : index
    %60 = vector.load %arg2[%c896, %c0_25] : memref<1984x128xbf16, #tpu.memory_space<vmem>>, vector<128x128xbf16>
    %cst_26 = arith.constant dense<0.000000e+00> : vector<64x128xf32>
    %61 = tpu.matmul %59, %60, %cst_26 {dimension_numbers = #tpu.dot_dimension_numbers<[1], [0], [0], [1], [0, 0, 1, 1], [], []>} : vector<64x128xbf16>, vector<128x128xbf16>, vector<64x128xf32> -> vector<64x128xf32>
    %62 = vector.extract_strided_slice %61 {offsets = [0, 0], sizes = [64, 64], strides = [1, 1]} : vector<64x128xf32> to vector<64x64xf32>
    %63 = vector.extract_strided_slice %61 {offsets = [0, 64], sizes = [64, 64], strides = [1, 1]} : vector<64x128xf32> to vector<64x64xf32>
    %64 = arith.maximumf %62, %63 : vector<64x64xf32>
    %65 = arith.truncf %64 : vector<64x64xf32> to vector<64x64xbf16>
    %c1024 = arith.constant 1024 : index
    %c0_27 = arith.constant 0 : index
    %66 = vector.load %arg2[%c1024, %c0_27] : memref<1984x128xbf16, #tpu.memory_space<vmem>>, vector<192x64xbf16>
    %cst_28 = arith.constant dense<0.000000e+00> : vector<192x64xf32>
    %67 = tpu.matmul %66, %65, %cst_28 {dimension_numbers = #tpu.dot_dimension_numbers<[1], [0], [0], [1], [0, 0, 1, 1], [], []>} : vector<192x64xbf16>, vector<64x64xbf16>, vector<192x64xf32> -> vector<192x64xf32>
    %68 = arith.truncf %67 : vector<192x64xf32> to vector<192x64xbf16>
    %69 = vector.extract_strided_slice %68 {offsets = [0, 0], sizes = [64, 64], strides = [1, 1]} : vector<192x64xbf16> to vector<64x64xbf16>
    %c1216 = arith.constant 1216 : index
    %c0_29 = arith.constant 0 : index
    %70 = vector.load %arg2[%c1216, %c0_29] : memref<1984x128xbf16, #tpu.memory_space<vmem>>, vector<64x128xbf16>
    %cst_30 = arith.constant dense<0.000000e+00> : vector<64x128xf32>
    %71 = tpu.matmul %69, %70, %cst_30 {dimension_numbers = #tpu.dot_dimension_numbers<[1], [0], [0], [1], [0, 0, 1, 1], [], []>} : vector<64x64xbf16>, vector<64x128xbf16>, vector<64x128xf32> -> vector<64x128xf32>
    %72 = vector.extract_strided_slice %68 {offsets = [64, 0], sizes = [64, 64], strides = [1, 1]} : vector<192x64xbf16> to vector<64x64xbf16>
    %c1280 = arith.constant 1280 : index
    %c0_31 = arith.constant 0 : index
    %73 = vector.load %arg2[%c1280, %c0_31] : memref<1984x128xbf16, #tpu.memory_space<vmem>>, vector<64x128xbf16>
    %cst_32 = arith.constant dense<0.000000e+00> : vector<64x128xf32>
    %74 = tpu.matmul %72, %73, %cst_32 {dimension_numbers = #tpu.dot_dimension_numbers<[1], [0], [0], [1], [0, 0, 1, 1], [], []>} : vector<64x64xbf16>, vector<64x128xbf16>, vector<64x128xf32> -> vector<64x128xf32>
    %75 = arith.addf %71, %74 : vector<64x128xf32>
    %76 = vector.extract_strided_slice %68 {offsets = [128, 0], sizes = [64, 64], strides = [1, 1]} : vector<192x64xbf16> to vector<64x64xbf16>
    %c1344 = arith.constant 1344 : index
    %c0_33 = arith.constant 0 : index
    %77 = vector.load %arg2[%c1344, %c0_33] : memref<1984x128xbf16, #tpu.memory_space<vmem>>, vector<64x128xbf16>
    %cst_34 = arith.constant dense<0.000000e+00> : vector<64x128xf32>
    %78 = tpu.matmul %76, %77, %cst_34 {dimension_numbers = #tpu.dot_dimension_numbers<[1], [0], [0], [1], [0, 0, 1, 1], [], []>} : vector<64x64xbf16>, vector<64x128xbf16>, vector<64x128xf32> -> vector<64x128xf32>
    %79 = arith.addf %75, %78 : vector<64x128xf32>
    %80 = vector.broadcast %6 : vector<1x128xf32> to vector<64x128xf32>
    %81 = arith.addf %79, %80 : vector<64x128xf32>
    %cst_35 = arith.constant 0.000000e+00 : f32
    %82 = vector.broadcast %cst_35 : f32 to vector<64x128xf32>
    %83 = arith.maximumf %81, %82 : vector<64x128xf32>
    %84 = arith.truncf %83 : vector<64x128xf32> to vector<64x128xbf16>
    %c1408 = arith.constant 1408 : index
    %c0_36 = arith.constant 0 : index
    %85 = vector.load %arg2[%c1408, %c0_36] : memref<1984x128xbf16, #tpu.memory_space<vmem>>, vector<64x64xbf16>
    %cst_37 = arith.constant dense<0.000000e+00> : vector<64x128xf32>
    %86 = tpu.matmul %85, %84, %cst_37 {dimension_numbers = #tpu.dot_dimension_numbers<[1], [0], [0], [1], [0, 0, 1, 1], [], []>} : vector<64x64xbf16>, vector<64x128xbf16>, vector<64x128xf32> -> vector<64x128xf32>
    %87 = vector.extract_strided_slice %86 {offsets = [0, 0], sizes = [32, 128], strides = [1, 1]} : vector<64x128xf32> to vector<32x128xf32>
    %88 = vector.extract_strided_slice %86 {offsets = [32, 0], sizes = [32, 128], strides = [1, 1]} : vector<64x128xf32> to vector<32x128xf32>
    %89 = arith.maximumf %87, %88 : vector<32x128xf32>
    %90 = arith.truncf %89 : vector<32x128xf32> to vector<32x128xbf16>
    %c1472 = arith.constant 1472 : index
    %c0_38 = arith.constant 0 : index
    %91 = vector.load %arg2[%c1472, %c0_38] : memref<1984x128xbf16, #tpu.memory_space<vmem>>, vector<128x128xbf16>
    %cst_39 = arith.constant dense<0.000000e+00> : vector<32x128xf32>
    %92 = tpu.matmul %90, %91, %cst_39 {dimension_numbers = #tpu.dot_dimension_numbers<[1], [0], [0], [1], [0, 0, 1, 1], [], []>} : vector<32x128xbf16>, vector<128x128xbf16>, vector<32x128xf32> -> vector<32x128xf32>
    %93 = vector.extract_strided_slice %92 {offsets = [0, 0], sizes = [32, 64], strides = [1, 1]} : vector<32x128xf32> to vector<32x64xf32>
    %94 = vector.extract_strided_slice %92 {offsets = [0, 64], sizes = [32, 64], strides = [1, 1]} : vector<32x128xf32> to vector<32x64xf32>
    %95 = arith.maximumf %93, %94 : vector<32x64xf32>
    %96 = arith.truncf %95 : vector<32x64xf32> to vector<32x64xbf16>
    %97 = vector.extract_strided_slice %96 {offsets = [0, 0], sizes = [8, 64], strides = [1, 1]} : vector<32x64xbf16> to vector<8x64xbf16>
    %c1600 = arith.constant 1600 : index
    %c0_40 = arith.constant 0 : index
    %98 = vector.load %arg2[%c1600, %c0_40] : memref<1984x128xbf16, #tpu.memory_space<vmem>>, vector<64x128xbf16>
    %cst_41 = arith.constant dense<0.000000e+00> : vector<8x128xf32>
    %99 = tpu.matmul %97, %98, %cst_41 {dimension_numbers = #tpu.dot_dimension_numbers<[1], [0], [0], [1], [0, 0, 1, 1], [], []>} : vector<8x64xbf16>, vector<64x128xbf16>, vector<8x128xf32> -> vector<8x128xf32>
    %100 = vector.extract_strided_slice %96 {offsets = [8, 0], sizes = [8, 64], strides = [1, 1]} : vector<32x64xbf16> to vector<8x64xbf16>
    %c1664 = arith.constant 1664 : index
    %c0_42 = arith.constant 0 : index
    %101 = vector.load %arg2[%c1664, %c0_42] : memref<1984x128xbf16, #tpu.memory_space<vmem>>, vector<64x128xbf16>
    %cst_43 = arith.constant dense<0.000000e+00> : vector<8x128xf32>
    %102 = tpu.matmul %100, %101, %cst_43 {dimension_numbers = #tpu.dot_dimension_numbers<[1], [0], [0], [1], [0, 0, 1, 1], [], []>} : vector<8x64xbf16>, vector<64x128xbf16>, vector<8x128xf32> -> vector<8x128xf32>
    %103 = arith.addf %99, %102 : vector<8x128xf32>
    %104 = vector.extract_strided_slice %96 {offsets = [16, 0], sizes = [8, 64], strides = [1, 1]} : vector<32x64xbf16> to vector<8x64xbf16>
    %c1728 = arith.constant 1728 : index
    %c0_44 = arith.constant 0 : index
    %105 = vector.load %arg2[%c1728, %c0_44] : memref<1984x128xbf16, #tpu.memory_space<vmem>>, vector<64x128xbf16>
    %cst_45 = arith.constant dense<0.000000e+00> : vector<8x128xf32>
    %106 = tpu.matmul %104, %105, %cst_45 {dimension_numbers = #tpu.dot_dimension_numbers<[1], [0], [0], [1], [0, 0, 1, 1], [], []>} : vector<8x64xbf16>, vector<64x128xbf16>, vector<8x128xf32> -> vector<8x128xf32>
    %107 = arith.addf %103, %106 : vector<8x128xf32>
    %108 = vector.extract_strided_slice %96 {offsets = [24, 0], sizes = [8, 64], strides = [1, 1]} : vector<32x64xbf16> to vector<8x64xbf16>
    %c1792 = arith.constant 1792 : index
    %c0_46 = arith.constant 0 : index
    %109 = vector.load %arg2[%c1792, %c0_46] : memref<1984x128xbf16, #tpu.memory_space<vmem>>, vector<64x128xbf16>
    %cst_47 = arith.constant dense<0.000000e+00> : vector<8x128xf32>
    %110 = tpu.matmul %108, %109, %cst_47 {dimension_numbers = #tpu.dot_dimension_numbers<[1], [0], [0], [1], [0, 0, 1, 1], [], []>} : vector<8x64xbf16>, vector<64x128xbf16>, vector<8x128xf32> -> vector<8x128xf32>
    %111 = arith.addf %107, %110 : vector<8x128xf32>
    %112 = vector.broadcast %7 : vector<1x128xf32> to vector<8x128xf32>
    %113 = arith.addf %111, %112 : vector<8x128xf32>
    %cst_48 = arith.constant 0.000000e+00 : f32
    %114 = vector.broadcast %cst_48 : f32 to vector<8x128xf32>
    %115 = arith.maximumf %113, %114 : vector<8x128xf32>
    %116 = arith.truncf %115 : vector<8x128xf32> to vector<8x128xbf16>
    %c1856 = arith.constant 1856 : index
    %c0_49 = arith.constant 0 : index
    %117 = vector.load %arg2[%c1856, %c0_49] : memref<1984x128xbf16, #tpu.memory_space<vmem>>, vector<128x128xbf16>
    %cst_50 = arith.constant dense<0.000000e+00> : vector<8x128xf32>
    %118 = tpu.matmul %116, %117, %cst_50 {dimension_numbers = #tpu.dot_dimension_numbers<[1], [0], [0], [1], [0, 0, 1, 1], [], []>} : vector<8x128xbf16>, vector<128x128xbf16>, vector<8x128xf32> -> vector<8x128xf32>
    %119 = vector.broadcast %8 : vector<1x128xf32> to vector<8x128xf32>
    %120 = arith.addf %118, %119 : vector<8x128xf32>
    %c0_51 = arith.constant 0 : index
    %c0_52 = arith.constant 0 : index
    %121 = vector.load %arg3[%c0_51, %c0_52] : memref<8x128xf32, #tpu.memory_space<vmem>>, vector<8x128xf32>
    tpu.vector_store %arg3[%c0_51, %c0_52], %120 {strides = array<i32>} : memref<8x128xf32, #tpu.memory_space<vmem>>, vector<8x128xf32>,
    return
  }
}

</mosaic_0001>

<bundles_post_ra>
// kernel: fused_forward.1
= control target key start
LH: loop header
LB: loop body
LE: loop exit
PB: predicated region body
PF: predicated region fallthrough
CT: control target
= control target key end

     0   :  { %vm91_vm0 = vcmask 64512   ;;  %s3117_s14 = smov 64   ;;  %vm1538_vm4 = vcmask 523264   ;;  %s3832_s1 = inlined_call_operand.vmem [shape: f32[144,128], index: 1, kind: input, shape index: {}]   ;;  %s3833_s0 = inlined_call_operand.vmem [shape: f32[128,128], index: 0, kind: input, shape index: {}]   ;;  %s3834_s2 = inlined_call_operand.vmem [shape: bf16[1984,128], index: 2, kind: input, shape index: {}]   ;;  %s3835_s3 = inlined_call_operand.vmem [shape: f32[8,128], index: 3, kind: output, shape index: {}]  }
   0x1   :  { %v30_v0 = vld [vmem:[%s3832_s1 + $0x78] sm:$0xff]  ;;  %v29_v1 = vld [vmem:[%s3832_s1 + $0x70] sm:$0xff]  ;;  %v28_v2 = vld [vmem:[%s3832_s1 + $0x68] sm:$0xff] }
   0x2   :  { %70 = vmatpush.msra.mxu0 %v30_v0  ;;  %169 = vmatpush.msra.mxu2 %v30_v0  ;;  %v27_v3 = vld [vmem:[%s3832_s1 + $0x60] sm:$0xff]  ;;  %v3158_v5 = vld [vmem:[%s3833_s0 + $0x8] sm:$0xff]  ;;  %v26_v6 = vld [vmem:[%s3832_s1 + $0x58] sm:$0xff] }
   0x3   :  { %v3153_v4 = vld [vmem:[%s3833_s0] sm:$0xff]  ;;  %v3166_v7 = vld [vmem:[%s3833_s0 + $0x10] sm:$0xff]  ;;  %v3173_v9 = vld [vmem:[%s3833_s0 + $0x18] sm:$0xff] }
   0x4   :  { %71 = vmatpush.msra.mxu0 %v29_v1  ;;  %170 = vmatpush.msra.mxu2 %v29_v1  ;;  %v49_v8 = vadd.f32 %v3158_v5, %v3153_v4  ;;  %v25_v10 = vld [vmem:[%s3832_s1 + $0x50] sm:$0xff]  ;;  %v3182_v12 = vld [vmem:[%s3833_s0 + $0x20] sm:$0xff]  ;;  %v24_v13 = vld [vmem:[%s3832_s1 + $0x48] sm:$0xff] }
   0x5   :  { %v3191_v15 = vld [vmem:[%s3833_s0 + $0x28] sm:$0xff]  ;;  %v23_v16 = vld [vmem:[%s3832_s1 + $0x40] sm:$0xff]  ;;  %v3200_v18 = vld [vmem:[%s3833_s0 + $0x30] sm:$0xff] }
   0x6   :  { %72 = vmatpush.msra.mxu0 %v28_v2  ;;  %171 = vmatpush.msra.mxu2 %v28_v2  ;;  %v50_v11 = vadd.f32 %v49_v8, %v3166_v7  ;;  %v22_v19 = vld [vmem:[%s3832_s1 + $0x38] sm:$0xff]  ;;  %v21_v22 = vld [vmem:[%s3832_s1 + $0x30] sm:$0xff]  ;;  %v3218_v24 = vld [vmem:[%s3833_s0 + $0x40] sm:$0xff] }
   0x7   :  { %v3209_v21 = vld [vmem:[%s3833_s0 + $0x38] sm:$0xff]  ;;  %v20_v25 = vld [vmem:[%s3832_s1 + $0x28] sm:$0xff]  ;;  %v19_v28 = vld [vmem:[%s3832_s1 + $0x20] sm:$0xff] }
   0x8   :  { %73 = vmatpush.msra.mxu0 %v27_v3  ;;  %172 = vmatpush.msra.mxu2 %v27_v3  ;;  %v51_v14 = vadd.f32 %v50_v11, %v3173_v9  ;;  %v3227_v27 = vld [vmem:[%s3833_s0 + $0x48] sm:$0xff]  ;;  %v3236_v30 = vld [vmem:[%s3833_s0 + $0x50] sm:$0xff]  ;;  %v18_v31 = vld [vmem:[%s3832_s1 + $0x18] sm:$0xff] }
   0x9   :  { %v3245_v33 = vld [vmem:[%s3833_s0 + $0x58] sm:$0xff]  ;;  %v17_v34 = vld [vmem:[%s3832_s1 + $0x10] sm:$0xff]  ;;  %v3254_v36 = vld [vmem:[%s3833_s0 + $0x60] sm:$0xff] }
   0xa   :  { %74 = vmatpush.msra.mxu0 %v26_v6  ;;  %173 = vmatpush.msra.mxu2 %v26_v6  ;;  %v52_v17 = vadd.f32 %v51_v14, %v3182_v12  ;;  %v16_v37 = vld [vmem:[%s3832_s1 + $0x8] sm:$0xff]  ;;  %v15_v40 = vld [vmem:[%s3832_s1] sm:$0xff]  ;;  %v47_v42 = vld [vmem:[%s3833_s0 + $0x70] sm:$0xff] }
   0xb   :  { %v46_v39 = vld [vmem:[%s3833_s0 + $0x68] sm:$0xff]  ;;  %v48_v44 = vld [vmem:[%s3833_s0 + $0x78] sm:$0xff]  ;;  %v31_v53 = vld [vmem:[%s3832_s1 + $0x80] sm:$0xff] }
   0xc   :  { %75 = vmatpush.msra.mxu0 %v25_v10  ;;  %174 = vmatpush.msra.mxu2 %v25_v10  ;;  %v53_v20 = vadd.f32 %v52_v17, %v3191_v15 }
   0xd   :  { %110 = vmatpush.msra.mxu3 %v31_v53 }
   0xe   :  { %76 = vmatpush.msra.mxu0 %v24_v13  ;;  %175 = vmatpush.msra.mxu2 %v24_v13  ;;  %v54_v23 = vadd.f32 %v53_v20, %v3200_v18 }
   0xf   :  { %219 = vmatpush.msrb.mxu3 %v31_v53 }
  0x10   :  { %77 = vmatpush.msra.mxu0 %v23_v16  ;;  %176 = vmatpush.msra.mxu2 %v23_v16  ;;  %v55_v26 = vadd.f32 %v54_v23, %v3209_v21 }
  0x12   :  { %78 = vmatpush.msra.mxu0 %v22_v19  ;;  %177 = vmatpush.msra.mxu2 %v22_v19  ;;  %v56_v29 = vadd.f32 %v55_v26, %v3218_v24 }
  0x14   :  { %79 = vmatpush.msra.mxu0 %v21_v22  ;;  %178 = vmatpush.msra.mxu2 %v21_v22  ;;  %v57_v32 = vadd.f32 %v56_v29, %v3227_v27 }
  0x16   :  { %80 = vmatpush.msra.mxu0 %v20_v25  ;;  %179 = vmatpush.msra.mxu2 %v20_v25  ;;  %v58_v35 = vadd.f32 %v57_v32, %v3236_v30 }
  0x18   :  { %81 = vmatpush.msra.mxu0 %v19_v28  ;;  %180 = vmatpush.msra.mxu2 %v19_v28  ;;  %v59_v38 = vadd.f32 %v58_v35, %v3245_v33 }
  0x1a   :  { %82 = vmatpush.msra.mxu0 %v18_v31  ;;  %181 = vmatpush.msra.mxu2 %v18_v31  ;;  %v60_v41 = vadd.f32 %v59_v38, %v3254_v36 }
  0x1c   :  { %83 = vmatpush.msra.mxu0 %v17_v34  ;;  %182 = vmatpush.msra.mxu2 %v17_v34  ;;  %v61_v43 = vadd.f32 %v60_v41, %v46_v39 }
  0x1e   :  { %84 = vmatpush.msra.mxu0 %v16_v37  ;;  %183 = vmatpush.msra.mxu2 %v16_v37  ;;  %v62_v45 = vadd.f32 %v61_v43, %v47_v42 }
  0x20   :  { %85 = vmatpush.msra.mxu0 %v15_v40  ;;  %184 = vmatpush.msra.mxu2 %v15_v40  ;;  %v63_v46 = vadd.f32 %v62_v45, %v48_v44 }
  0x22   :  { %v64_v47 = vrot.slane %v63_v46, 4 }
  0x24   :  { %v65_v48 = vadd.f32 %v64_v47, %v63_v46 }
  0x26   :  { %v66_v49 = vrot.slane %v65_v48, 2 }
  0x28   :  { %v67_v50 = vadd.f32 %v66_v49, %v65_v48 }
  0x2a   :  { %v68_v51 = vrot.slane %v67_v50, 1 }
  0x2c   :  { %v69_v52 = vadd.f32 %v68_v51, %v67_v50 }
  0x2e   :  { %86 = vmatmul.f32.vlgmr.msra.gmra.mxu0 %v69_v52 }
  0xab   :  { %v87_v54 = vpop.f32.mrf.mxu0 }
  0xac   :  { %v90_v55 = vmul.f32 0.00048828125, %v87_v54 }
  0xae   :  { %2439 = vmatmul.msk.f32.vlgmr.msra.gmra.mxu3 %vm91_vm0, %v90_v55 }
 0x131   :  { %v112_v56 = vpop.f32.mrf.mxu3 }
 0x132   :  { %v115_v57 = vperm.slane %v112_v56, 0 }
 0x134   :  { %v3278_v58 = vsub.f32 %v3153_v4, %v115_v57  ;;  %v3281_v59 = vsub.f32 %v3158_v5, %v115_v57  ;;  %v3284_v60 = vsub.f32 %v3166_v7, %v115_v57  ;;  %v3291_v63 = vsub.f32 %v3173_v9, %v115_v57 }
 0x135   :  { %v3294_v0 = vsub.f32 %v3182_v12, %v115_v57  ;;  %v3299_v3 = vsub.f32 %v3191_v15, %v115_v57  ;;  %v3304_v6 = vsub.f32 %v3200_v18, %v115_v57  ;;  %v3309_v9 = vsub.f32 %v3209_v21, %v115_v57 }
 0x136   :  { %v132_v61 = vmul.f32 %v3278_v58, %v3278_v58  ;;  %v133_v62 = vmul.f32 %v3281_v59, %v3281_v59  ;;  %v134_v1 = vmul.f32 %v3284_v60, %v3284_v60  ;;  %v135_v4 = vmul.f32 %v3291_v63, %v3291_v63 }
 0x137   :  { %v136_v7 = vmul.f32 %v3294_v0, %v3294_v0  ;;  %v137_v10 = vmul.f32 %v3299_v3, %v3299_v3  ;;  %v3314_v12 = vsub.f32 %v3218_v24, %v115_v57  ;;  %v138_v13 = vmul.f32 %v3304_v6, %v3304_v6 }
 0x138   :  { %v148_v2 = vadd.f32 %v133_v62, %v132_v61  ;;  %v3319_v15 = vsub.f32 %v3227_v27, %v115_v57  ;;  %v139_v16 = vmul.f32 %v3309_v9, %v3309_v9  ;;  %v126_v18 = vsub.f32 %v3236_v30, %v115_v57 }
 0x139   :  { %v140_v19 = vmul.f32 %v3314_v12, %v3314_v12  ;;  %v127_v21 = vsub.f32 %v3245_v33, %v115_v57  ;;  %v128_v24 = vsub.f32 %v3254_v36, %v115_v57  ;;  %v129_v27 = vsub.f32 %v46_v39, %v115_v57 }
 0x13a   :  { %v149_v5 = vadd.f32 %v148_v2, %v134_v1  ;;  %v141_v22 = vmul.f32 %v3319_v15, %v3319_v15  ;;  %v142_v25 = vmul.f32 %v126_v18, %v126_v18  ;;  %v130_v31 = vsub.f32 %v47_v42, %v115_v57 }
 0x13b   :  { %v143_v28 = vmul.f32 %v127_v21, %v127_v21  ;;  %v144_v32 = vmul.f32 %v128_v24, %v128_v24  ;;  %v131_v34 = vsub.f32 %v48_v44, %v115_v57  ;;  %v145_v35 = vmul.f32 %v129_v27, %v129_v27  ;;  %v3334_v57 = vld [vmem:[%s3832_s1 + $0x88] sm:$0xff] }
 0x13c   :  { %v150_v8 = vadd.f32 %v149_v5, %v135_v4  ;;  %v146_v38 = vmul.f32 %v130_v31, %v130_v31  ;;  %v241_v1 = vperm.slane %v3334_v57, 0  ;;  %v258_v2 = vperm.slane %v3334_v57, 1 }
 0x13d   :  { %v147_v33 = vmul.f32 %v131_v34, %v131_v34 }
 0x13e   :  { %v151_v11 = vadd.f32 %v150_v8, %v136_v7 }
 0x140   :  { %v152_v14 = vadd.f32 %v151_v11, %v137_v10 }
 0x142   :  { %v153_v17 = vadd.f32 %v152_v14, %v138_v13 }
 0x144   :  { %v154_v20 = vadd.f32 %v153_v17, %v139_v16 }
 0x146   :  { %v155_v23 = vadd.f32 %v154_v20, %v140_v19 }
 0x148   :  { %v156_v26 = vadd.f32 %v155_v23, %v141_v22 }
 0x14a   :  { %v157_v29 = vadd.f32 %v156_v26, %v142_v25 }
 0x14c   :  { %v158_v30 = vadd.f32 %v157_v29, %v143_v28 }
 0x14e   :  { %v159_v37 = vadd.f32 %v158_v30, %v144_v32 }
 0x150   :  { %v160_v40 = vadd.f32 %v159_v37, %v145_v35 }
 0x152   :  { %v161_v41 = vadd.f32 %v160_v40, %v146_v38 }
 0x154   :  { %v162_v43 = vadd.f32 %v161_v41, %v147_v33 }
 0x156   :  { %v163_v45 = vrot.slane %v162_v43, 4 }
 0x158   :  { %v164_v46 = vadd.f32 %v163_v45, %v162_v43 }
 0x15a   :  { %v165_v47 = vrot.slane %v164_v46, 2 }
 0x15c   :  { %v166_v36 = vadd.f32 %v165_v47, %v164_v46 }
 0x15e   :  { %v167_v48 = vrot.slane %v166_v36, 1 }
 0x160   :  { %v168_v49 = vadd.f32 %v167_v48, %v166_v36 }
 0x162   :  { %185 = vmatmul.f32.vlgmr.msra.gmra.mxu2 %v168_v49 }
 0x1e5   :  { %v186_v39 = vpop.f32.mrf.mxu2 }
 0x1e6   :  { %v189_v50 = vmul.f32 0.00048828125, %v186_v39 }
 0x1e8   :  { %v190_v42 = vadd.f32 1e-05, %v189_v50 }
 0x1ea   :  { %3114 = vrsqrt.f32 %v190_v42  ;;  %vm197_vm2 = vweird.f32 %v190_v42 }
 0x1f0   :  { %v3115_v51 = vpop.eup %3114 }
 0x1f1   :  { %v192_v44 = vmul.f32 %v3115_v51, %v190_v42  ;;  %vm198_vm1 = vweird.f32 %v3115_v51 }
 0x1f2   :  { %vm199_vm3 = vmor %vm197_vm2, %vm198_vm1 }
 0x1f3   :  { %v193_v52 = vmul.f32 %v3115_v51, %v192_v44 }
 0x1f5   :  { %v194_v53 = vmul.f32 0.5, %v193_v52 }
 0x1f7   :  { %v195_v54 = vsub.f32 1.5, %v194_v53 }
 0x1f9   :  { %v196_v55 = vmul.f32 %v3115_v51, %v195_v54 }
 0x1fb   :  { %v200_v56 = vsel %vm199_vm3, %v3115_v51, %v196_v55 }
 0x1fc   :  { %2440 = vmatmul.msk.f32.vlgmr.msrb.gmra.mxu3 %vm91_vm0, %v200_v56  ;;  %v2971_v56 = vld [vmem:[%s3834_s2 + $0x10] sm:$0xff] }
 0x27f   :  { %v221_v61 = vpop.f32.mrf.mxu3 }
 0x280   :  { %v224_v62 = vperm.slane %v221_v61, 0  ;;  %v2972_v61 = vld [vmem:[%s3834_s2 + $0x18] sm:$0xff] }
 0x282   :  { %v239_v4 = vmul.f32 %v224_v62, %v130_v31  ;;  %v240_v5 = vmul.f32 %v224_v62, %v131_v34  ;;  %v237_v7 = vmul.f32 %v224_v62, %v128_v24  ;;  %v238_v8 = vmul.f32 %v224_v62, %v129_v27 }
 0x283   :  { %v235_v10 = vmul.f32 %v224_v62, %v126_v18  ;;  %v236_v11 = vmul.f32 %v224_v62, %v127_v21  ;;  %v233_v25 = vmul.f32 %v224_v62, %v3314_v12  ;;  %v234_v26 = vmul.f32 %v224_v62, %v3319_v15 }
 0x284   :  { %v256_v13 = vmul.f32 %v241_v1, %v239_v4  ;;  %v257_v14 = vmul.f32 %v241_v1, %v240_v5  ;;  %v254_v16 = vmul.f32 %v241_v1, %v237_v7  ;;  %v255_v17 = vmul.f32 %v241_v1, %v238_v8  ;;  %v2999_v4 = vld [vmem:[%s3834_s2 + $0xf0] sm:$0xff]  ;;  %v2998_v5 = vld [vmem:[%s3834_s2 + $0xe8] sm:$0xff]  ;;  %v2997_v7 = vld [vmem:[%s3834_s2 + $0xe0] sm:$0xff] }
 0x285   :  { %v252_v22 = vmul.f32 %v241_v1, %v235_v10  ;;  %v253_v23 = vmul.f32 %v241_v1, %v236_v11  ;;  %v250_v18 = vmul.f32 %v241_v1, %v233_v25  ;;  %v251_v21 = vmul.f32 %v241_v1, %v234_v26  ;;  %v2975_v8 = vld [vmem:[%s3834_s2 + $0x30] sm:$0xff]  ;;  %v2996_v10 = vld [vmem:[%s3834_s2 + $0xd8] sm:$0xff] }
 0x286   :  { %v273_v19 = vadd.f32 %v258_v2, %v256_v13  ;;  %v274_v20 = vadd.f32 %v258_v2, %v257_v14  ;;  %v271_v29 = vadd.f32 %v258_v2, %v254_v16  ;;  %v272_v31 = vadd.f32 %v258_v2, %v255_v17  ;;  %v2995_v11 = vld [vmem:[%s3834_s2 + $0xd0] sm:$0xff]  ;;  %v2994_v13 = vld [vmem:[%s3834_s2 + $0xc8] sm:$0xff]  ;;  %v2993_v14 = vld [vmem:[%s3834_s2 + $0xc0] sm:$0xff] }
 0x287   :  { %v269_v24 = vadd.f32 %v258_v2, %v252_v22  ;;  %v270_v27 = vadd.f32 %v258_v2, %v253_v23  ;;  %v231_v30 = vmul.f32 %v224_v62, %v3304_v6  ;;  %v232_v34 = vmul.f32 %v224_v62, %v3309_v9  ;;  %v2976_v16 = vld [vmem:[%s3834_s2 + $0x38] sm:$0xff]  ;;  %v2977_v17 = vld [vmem:[%s3834_s2 + $0x40] sm:$0xff] }
 0x288   :  { %v282_v28 = vpack.c.bf16 %v274_v20, %v273_v19  ;;  %v281_v32 = vpack.c.bf16 %v272_v31, %v271_v29  ;;  %v267_v37 = vadd.f32 %v258_v2, %v250_v18  ;;  %v268_v38 = vadd.f32 %v258_v2, %v251_v21  ;;  %v2978_v29 = vld [vmem:[%s3834_s2 + $0x48] sm:$0xff] }
 0x289   :  { %v280_v35 = vpack.c.bf16 %v270_v27, %v269_v24  ;;  %v248_v12 = vmul.f32 %v241_v1, %v231_v30  ;;  %v249_v40 = vmul.f32 %v241_v1, %v232_v34  ;;  %v229_v15 = vmul.f32 %v224_v62, %v3294_v0  ;;  %v2979_v34 = vld [vmem:[%s3834_s2 + $0x50] sm:$0xff] }
 0x28a   :  { %475 = vmatpush.bf16.msra.mxu1 %v282_v28  ;;  %v230_v33 = vmul.f32 %v224_v62, %v3299_v3  ;;  %v279_v41 = vpack.c.bf16 %v268_v38, %v267_v37  ;;  %v227_v43 = vmul.f32 %v224_v62, %v3284_v60  ;;  %v228_v45 = vmul.f32 %v224_v62, %v3291_v63 }
 0x28b   :  { %v265_v46 = vadd.f32 %v258_v2, %v248_v12  ;;  %v266_v6 = vadd.f32 %v258_v2, %v249_v40  ;;  %v246_v47 = vmul.f32 %v241_v1, %v229_v15  ;;  %v225_v48 = vmul.f32 %v224_v62, %v3278_v58  ;;  %v2969_v58 = vld [vmem:[%s3834_s2] sm:$0xff] }
 0x28c   :  { %v247_v9 = vmul.f32 %v241_v1, %v230_v33  ;;  %v244_v36 = vmul.f32 %v241_v1, %v227_v43  ;;  %v226_v49 = vmul.f32 %v224_v62, %v3281_v59  ;;  %v245_v3 = vmul.f32 %v241_v1, %v228_v45  ;;  %v2970_v59 = vld [vmem:[%s3834_s2 + $0x8] sm:$0xff]  ;;  %v2973_v62 = vld [vmem:[%s3834_s2 + $0x20] sm:$0xff] }
 0x28d   :  { %v278_v39 = vpack.c.bf16 %v266_v6, %v265_v46  ;;  %v263_v0 = vadd.f32 %v258_v2, %v246_v47  ;;  %v242_v42 = vmul.f32 %v241_v1, %v225_v48  ;;  %v2981_v48 = vld [vmem:[%s3834_s2 + $0x60] sm:$0xff] }
 0x28e   :  { %476 = vmatpush.bf16.msra.mxu1 %v281_v32  ;;  %v264_v50 = vadd.f32 %v258_v2, %v247_v9  ;;  %v261_v60 = vadd.f32 %v258_v2, %v244_v36  ;;  %v262_v44 = vadd.f32 %v258_v2, %v245_v3  ;;  %v243_v63 = vmul.f32 %v241_v1, %v226_v49  ;;  %v3000_v1 = vld [vmem:[%s3834_s2 + $0xf8] sm:$0xff] }
 0x28f   :  { %v259_v53 = vadd.f32 %v258_v2, %v242_v42  ;;  %925 = vmatpush.bf16.msrb.mxu0 %v3000_v1  ;;  %v2983_v1 = vld [vmem:[%s3834_s2 + $0x70] sm:$0xff] }
 0x290   :  { %v277_v51 = vpack.c.bf16 %v264_v50, %v263_v0  ;;  %v276_v52 = vpack.c.bf16 %v262_v44, %v261_v60  ;;  %v260_v54 = vadd.f32 %v258_v2, %v243_v63  ;;  %v2974_v2 = vld [vmem:[%s3834_s2 + $0x28] sm:$0xff]  ;;  %v3008_v63 = vld [vmem:[%s3834_s2 + $0x138] sm:$0xff] }
 0x291   :  { %v2982_v60 = vld [vmem:[%s3834_s2 + $0x68] sm:$0xff]  ;;  %780 = vmatpush.bf16.msra.mxu3 %v3008_v63 }
 0x292   :  { %477 = vmatpush.bf16.msra.mxu1 %v280_v35  ;;  %v275_v55 = vpack.c.bf16 %v260_v54, %v259_v53 }
 0x293   :  { %926 = vmatpush.bf16.msrb.mxu0 %v2999_v4  ;;  %v3004_v4 = vld [vmem:[%s3834_s2 + $0x118] sm:$0xff] }
 0x296   :  { %478 = vmatpush.bf16.msra.mxu1 %v279_v41  ;;  %v2980_v41 = vld [vmem:[%s3834_s2 + $0x58] sm:$0xff] }
 0x297   :  { %927 = vmatpush.bf16.msrb.mxu0 %v2998_v5  ;;  %v3003_v5 = vld [vmem:[%s3834_s2 + $0x110] sm:$0xff] }
 0x29a   :  { %479 = vmatpush.bf16.msra.mxu1 %v278_v39 }
 0x29b   :  { %928 = vmatpush.bf16.msrb.mxu0 %v2997_v7 }
 0x29e   :  { %480 = vmatpush.bf16.msra.mxu1 %v277_v51 }
 0x29f   :  { %929 = vmatpush.bf16.msrb.mxu0 %v2996_v10 }
 0x2a2   :  { %481 = vmatpush.bf16.msra.mxu1 %v276_v52  ;;  %v3007_v52 = vld [vmem:[%s3834_s2 + $0x130] sm:$0xff] }
 0x2a3   :  { %930 = vmatpush.bf16.msrb.mxu0 %v2995_v11  ;;  %781 = vmatpush.bf16.msra.mxu3 %v3007_v52 }
 0x2a6   :  { %482 = vmatpush.bf16.msra.mxu1 %v275_v55 }
 0x2a7   :  { %931 = vmatpush.bf16.msrb.mxu0 %v2994_v13 }
 0x2a9   :  { %483 = vmatmul.bf16.vlgmr.msra.gmra.mxu1 %v2969_v58 }
 0x2ab   :  { %932 = vmatpush.bf16.msrb.mxu0 %v2993_v14 }
 0x2b9   :  { %488 = vmatmul.bf16.gmra.mxu1 %v2970_v59 }
 0x2c9   :  { %493 = vmatmul.bf16.gmra.mxu1 %v2971_v56  ;;  %v3006_v56 = vld [vmem:[%s3834_s2 + $0x128] sm:$0xff] }
 0x2ca   :  { %782 = vmatpush.bf16.msra.mxu3 %v3006_v56  ;;  %v2990_v56 = vld [vmem:[%s3834_s2 + $0xa8] sm:$0xff] }
 0x2d9   :  { %498 = vmatmul.bf16.gmra.mxu1 %v2972_v61 }
 0x2e9   :  { %503 = vmatmul.bf16.gmra.mxu1 %v2973_v62  ;;  %v3005_v62 = vld [vmem:[%s3834_s2 + $0x120] sm:$0xff] }
 0x2ea   :  { %783 = vmatpush.bf16.msra.mxu3 %v3005_v62  ;;  %v3016_v62 = vld [vmem:[%s3834_s2 + $0x178] sm:$0xff] }
 0x2eb   :  { %1086 = vmatpush.bf16.msrb.mxu2 %v3016_v62 }
 0x2ee   :  { %784 = vmatpush.bf16.msra.mxu3 %v3004_v4 }
 0x2f2   :  { %785 = vmatpush.bf16.msra.mxu3 %v3003_v5 }
 0x2f9   :  { %508 = vmatmul.bf16.gmra.mxu1 %v2974_v2 }
 0x309   :  { %513 = vmatmul.bf16.gmra.mxu1 %v2975_v8 }
 0x319   :  { %518 = vmatmul.bf16.gmra.mxu1 %v2976_v16  ;;  %v3002_v16 = vld [vmem:[%s3834_s2 + $0x108] sm:$0xff] }
 0x31a   :  { %786 = vmatpush.bf16.msra.mxu3 %v3002_v16 }
 0x326   :  { %v484_v19 = vpop.f32.mrf.mxu1 }
 0x327   :  { %v604_v20 = vpack.c.bf16 %v484_v19, %v484_v19  ;;  %v3001_v19 = vld [vmem:[%s3834_s2 + $0x100] sm:$0xff] }
 0x328   :  { %787 = vmatpush.bf16.msra.mxu3 %v3001_v19  ;;  %v3011_v19 = vld [vmem:[%s3834_s2 + $0x150] sm:$0xff] }
 0x329   :  { %523 = vmatmul.bf16.gmra.mxu1 %v2977_v17  ;;  %v845_v25 = vunpack.c.l.b16 %v604_v20  ;;  %v2984_v17 = vld [vmem:[%s3834_s2 + $0x78] sm:$0xff] }
 0x32e   :  { %v486_v22 = vpop.f32.mrf.mxu1 }
 0x32f   :  { %v605_v23 = vpack.c.bf16 %v486_v22, %v486_v22 }
 0x331   :  { %v846_v26 = vunpack.c.l.b16 %v605_v23 }
 0x333   :  { %v861_v28 = vpack.c.b16 %v846_v26, %v845_v25 }
 0x335   :  { %933 = vmatmul.bf16.vlgmr.msrb.gmra.mxu0 %v861_v28 }
 0x336   :  { %v489_v31 = vpop.f32.mrf.mxu1 }
 0x337   :  { %v606_v24 = vpack.c.bf16 %v489_v31, %v489_v31  ;;  %v2985_v31 = vld [vmem:[%s3834_s2 + $0x80] sm:$0xff] }
 0x339   :  { %528 = vmatmul.bf16.gmra.mxu1 %v2978_v29  ;;  %v847_v21 = vunpack.c.l.b16 %v606_v24 }
 0x33e   :  { %v491_v27 = vpop.f32.mrf.mxu1 }
 0x33f   :  { %v607_v18 = vpack.c.bf16 %v491_v27, %v491_v27 }
 0x341   :  { %v848_v32 = vunpack.c.l.b16 %v607_v18 }
 0x343   :  { %v862_v30 = vpack.c.b16 %v848_v32, %v847_v21 }
 0x345   :  { %938 = vmatmul.bf16.gmra.mxu0 %v862_v30 }
 0x346   :  { %v494_v35 = vpop.f32.mrf.mxu1 }
 0x347   :  { %v608_v37 = vpack.c.bf16 %v494_v35, %v494_v35  ;;  %v2986_v35 = vld [vmem:[%s3834_s2 + $0x88] sm:$0xff] }
 0x349   :  { %533 = vmatmul.bf16.gmra.mxu1 %v2979_v34  ;;  %v849_v40 = vunpack.c.l.b16 %v608_v37 }
 0x34e   :  { %v496_v38 = vpop.f32.mrf.mxu1 }
 0x34f   :  { %v609_v12 = vpack.c.bf16 %v496_v38, %v496_v38 }
 0x351   :  { %v850_v15 = vunpack.c.l.b16 %v609_v12 }
 0x353   :  { %v863_v33 = vpack.c.b16 %v850_v15, %v849_v40 }
 0x355   :  { %943 = vmatmul.bf16.gmra.mxu0 %v863_v33 }
 0x356   :  { %v499_v43 = vpop.f32.mrf.mxu1 }
 0x357   :  { %v610_v45 = vpack.c.bf16 %v499_v43, %v499_v43  ;;  %v2987_v43 = vld [vmem:[%s3834_s2 + $0x90] sm:$0xff] }
 0x359   :  { %538 = vmatmul.bf16.gmra.mxu1 %v2980_v41  ;;  %v851_v47 = vunpack.c.l.b16 %v610_v45 }
 0x35e   :  { %v501_v46 = vpop.f32.mrf.mxu1 }
 0x35f   :  { %v611_v6 = vpack.c.bf16 %v501_v46, %v501_v46 }
 0x361   :  { %v852_v9 = vunpack.c.l.b16 %v611_v6 }
 0x363   :  { %v864_v36 = vpack.c.b16 %v852_v9, %v851_v47 }
 0x365   :  { %948 = vmatmul.bf16.gmra.mxu0 %v864_v36 }
 0x366   :  { %v504_v49 = vpop.f32.mrf.mxu1 }
 0x367   :  { %v612_v39 = vpack.c.bf16 %v504_v49, %v504_v49  ;;  %v2988_v49 = vld [vmem:[%s3834_s2 + $0x98] sm:$0xff] }
 0x369   :  { %543 = vmatmul.bf16.gmra.mxu1 %v2981_v48  ;;  %v853_v3 = vunpack.c.l.b16 %v612_v39 }
 0x36e   :  { %v506_v0 = vpop.f32.mrf.mxu1 }
 0x36f   :  { %v613_v50 = vpack.c.bf16 %v506_v0, %v506_v0 }
 0x371   :  { %v854_v42 = vunpack.c.l.b16 %v613_v50 }
 0x373   :  { %v865_v51 = vpack.c.b16 %v854_v42, %v853_v3 }
 0x375   :  { %953 = vmatmul.bf16.gmra.mxu0 %v865_v51 }
 0x376   :  { %v509_v44 = vpop.f32.mrf.mxu1 }
 0x377   :  { %v614_v53 = vpack.c.bf16 %v509_v44, %v509_v44  ;;  %v2989_v44 = vld [vmem:[%s3834_s2 + $0xa0] sm:$0xff] }
 0x379   :  { %548 = vmatmul.bf16.gmra.mxu1 %v2982_v60  ;;  %v855_v58 = vunpack.c.l.b16 %v614_v53 }
 0x37e   :  { %v511_v54 = vpop.f32.mrf.mxu1 }
 0x37f   :  { %v615_v55 = vpack.c.bf16 %v511_v54, %v511_v54 }
 0x381   :  { %v856_v59 = vunpack.c.l.b16 %v615_v55 }
 0x383   :  { %v866_v61 = vpack.c.b16 %v856_v59, %v855_v58 }
 0x385   :  { %958 = vmatmul.bf16.gmra.mxu0 %v866_v61 }
 0x386   :  { %v514_v2 = vpop.f32.mrf.mxu1 }
 0x387   :  { %v616_v7 = vpack.c.bf16 %v514_v2, %v514_v2 }
 0x389   :  { %553 = vmatmul.bf16.gmra.mxu1 %v2983_v1  ;;  %v857_v11 = vunpack.c.l.b16 %v616_v7  ;;  %v3015_v1 = vld [vmem:[%s3834_s2 + $0x170] sm:$0xff] }
 0x38a   :  { %1087 = vmatpush.bf16.msrb.mxu2 %v3015_v1 }
 0x38e   :  { %v516_v8 = vpop.f32.mrf.mxu1 }
 0x38f   :  { %v617_v10 = vpack.c.bf16 %v516_v8, %v516_v8 }
 0x391   :  { %v858_v13 = vunpack.c.l.b16 %v617_v10  ;;  %v3014_v10 = vld [vmem:[%s3834_s2 + $0x168] sm:$0xff] }
 0x392   :  { %1088 = vmatpush.bf16.msrb.mxu2 %v3014_v10 }
 0x393   :  { %v867_v14 = vpack.c.b16 %v858_v13, %v857_v11  ;;  %v3013_v13 = vld [vmem:[%s3834_s2 + $0x160] sm:$0xff] }
 0x395   :  { %963 = vmatmul.bf16.gmra.mxu0 %v867_v14  ;;  %v2991_v14 = vld [vmem:[%s3834_s2 + $0xb0] sm:$0xff] }
 0x396   :  { %v519_v20 = vpop.f32.mrf.mxu1  ;;  %1089 = vmatpush.bf16.msrb.mxu2 %v3013_v13 }
 0x397   :  { %v618_v22 = vpack.c.bf16 %v519_v20, %v519_v20 }
 0x399   :  { %558 = vmatmul.bf16.gmra.mxu1 %v2984_v17  ;;  %v859_v26 = vunpack.c.l.b16 %v618_v22  ;;  %v3012_v17 = vld [vmem:[%s3834_s2 + $0x158] sm:$0xff] }
 0x39a   :  { %1090 = vmatpush.bf16.msrb.mxu2 %v3012_v17 }
 0x39e   :  { %v521_v23 = vpop.f32.mrf.mxu1  ;;  %1091 = vmatpush.bf16.msrb.mxu2 %v3011_v19 }
 0x39f   :  { %v619_v25 = vpack.c.bf16 %v521_v23, %v521_v23 }
 0x3a1   :  { %v860_v28 = vunpack.c.l.b16 %v619_v25 }
 0x3a3   :  { %v868_v29 = vpack.c.b16 %v860_v28, %v859_v26 }
 0x3a5   :  { %968 = vmatmul.bf16.gmra.mxu0 %v868_v29  ;;  %v3010_v29 = vld [vmem:[%s3834_s2 + $0x148] sm:$0xff] }
 0x3a6   :  { %v524_v24 = vpop.f32.mrf.mxu1  ;;  %1092 = vmatpush.bf16.msrb.mxu2 %v3010_v29 }
 0x3a7   :  { %v620_v27 = vpack.c.bf16 %v524_v24, %v524_v24  ;;  %v3009_v24 = vld [vmem:[%s3834_s2 + $0x140] sm:$0xff] }
 0x3a9   :  { %563 = vmatmul.bf16.gmra.mxu1 %v2985_v31  ;;  %v700_v32 = vunpack.c.l.b16 %v620_v27  ;;  %v2992_v31 = vld [vmem:[%s3834_s2 + $0xb8] sm:$0xff] }
 0x3aa   :  { %1093 = vmatpush.bf16.msrb.mxu2 %v3009_v24 }
 0x3ae   :  { %v526_v18 = vpop.f32.mrf.mxu1 }
 0x3af   :  { %v621_v21 = vpack.c.bf16 %v526_v18, %v526_v18 }
 0x3b1   :  { %v701_v30 = vunpack.c.l.b16 %v621_v21 }
 0x3b3   :  { %v716_v34 = vpack.c.b16 %v701_v30, %v700_v32 }
 0x3b5   :  { %788 = vmatmul.bf16.vlgmr.msra.gmra.mxu3 %v716_v34 }
 0x3b6   :  { %v529_v37 = vpop.f32.mrf.mxu1 }
 0x3b7   :  { %v622_v38 = vpack.c.bf16 %v529_v37, %v529_v37 }
 0x3b9   :  { %568 = vmatmul.bf16.gmra.mxu1 %v2986_v35  ;;  %v702_v15 = vunpack.c.l.b16 %v622_v38  ;;  %v3492_v38 = vpop.f32.mrf.mxu0 }
 0x3be   :  { %v531_v12 = vpop.f32.mrf.mxu1 }
 0x3bf   :  { %v623_v40 = vpack.c.bf16 %v531_v12, %v531_v12 }
 0x3c1   :  { %v703_v33 = vunpack.c.l.b16 %v623_v40 }
 0x3c3   :  { %v717_v41 = vpack.c.b16 %v703_v33, %v702_v15 }
 0x3c5   :  { %793 = vmatmul.bf16.gmra.mxu3 %v717_v41 }
 0x3c6   :  { %v534_v45 = vpop.f32.mrf.mxu1 }
 0x3c7   :  { %v624_v46 = vpack.c.bf16 %v534_v45, %v534_v45 }
 0x3c9   :  { %573 = vmatmul.bf16.gmra.mxu1 %v2987_v43  ;;  %v704_v9 = vunpack.c.l.b16 %v624_v46  ;;  %v3494_v43 = vpop.f32.mrf.mxu0 }
 0x3ce   :  { %v536_v6 = vpop.f32.mrf.mxu1 }
 0x3cf   :  { %v625_v47 = vpack.c.bf16 %v536_v6, %v536_v6 }
 0x3d1   :  { %v705_v36 = vunpack.c.l.b16 %v625_v47  ;;  %v3498_v47 = vpop.f32.mrf.mxu0 }
 0x3d3   :  { %v718_v48 = vpack.c.b16 %v705_v36, %v704_v9 }
 0x3d5   :  { %798 = vmatmul.bf16.gmra.mxu3 %v718_v48 }
 0x3d6   :  { %v539_v39 = vpop.f32.mrf.mxu1 }
 0x3d7   :  { %v626_v0 = vpack.c.bf16 %v539_v39, %v539_v39 }
 0x3d9   :  { %578 = vmatmul.bf16.gmra.mxu1 %v2988_v49  ;;  %v706_v42 = vunpack.c.l.b16 %v626_v0 }
 0x3de   :  { %v541_v50 = vpop.f32.mrf.mxu1 }
 0x3df   :  { %v627_v3 = vpack.c.bf16 %v541_v50, %v541_v50 }
 0x3e1   :  { %v707_v51 = vunpack.c.l.b16 %v627_v3  ;;  %v3502_v3 = vpop.f32.mrf.mxu0 }
 0x3e3   :  { %v719_v60 = vpack.c.b16 %v707_v51, %v706_v42 }
 0x3e5   :  { %803 = vmatmul.bf16.gmra.mxu3 %v719_v60 }
 0x3e6   :  { %v544_v63 = vpop.f32.mrf.mxu1 }
 0x3e7   :  { %v628_v52 = vpack.c.bf16 %v544_v63, %v544_v63 }
 0x3e9   :  { %583 = vmatmul.bf16.gmra.mxu1 %v2989_v44  ;;  %v708_v55 = vunpack.c.l.b16 %v628_v52  ;;  %v3506_v52 = vpop.f32.mrf.mxu0 }
 0x3ee   :  { %v546_v53 = vpop.f32.mrf.mxu1 }
 0x3ef   :  { %v629_v54 = vpack.c.bf16 %v546_v53, %v546_v53 }
 0x3f1   :  { %v709_v58 = vunpack.c.l.b16 %v629_v54 }
 0x3f3   :  { %v720_v59 = vpack.c.b16 %v709_v58, %v708_v55 }
 0x3f5   :  { %808 = vmatmul.bf16.gmra.mxu3 %v720_v59 }
 0x3f6   :  { %v549_v61 = vpop.f32.mrf.mxu1 }
 0x3f7   :  { %v630_v2 = vpack.c.bf16 %v549_v61, %v549_v61  ;;  %v3510_v61 = vpop.f32.mrf.mxu0 }
 0x3f9   :  { %588 = vmatmul.bf16.gmra.mxu1 %v2990_v56  ;;  %v710_v7 = vunpack.c.l.b16 %v630_v2 }
 0x3fe   :  { %v551_v4 = vpop.f32.mrf.mxu1 }
 0x3ff   :  { %v631_v5 = vpack.c.bf16 %v551_v4, %v551_v4  ;;  %v949_v10 = vpop.f32.mrf.mxu0 }
 0x401   :  { %v711_v8 = vunpack.c.l.b16 %v631_v5 }
 0x403   :  { %v721_v11 = vpack.c.b16 %v711_v8, %v710_v7 }
 0x405   :  { %813 = vmatmul.bf16.gmra.mxu3 %v721_v11 }
 0x406   :  { %v554_v16 = vpop.f32.mrf.mxu1 }
 0x407   :  { %v632_v20 = vpack.c.bf16 %v554_v16, %v554_v16  ;;  %v3514_v16 = vpop.f32.mrf.mxu0 }
 0x409   :  { %593 = vmatmul.bf16.gmra.mxu1 %v2991_v14  ;;  %v712_v25 = vunpack.c.l.b16 %v632_v20 }
 0x40e   :  { %v556_v22 = vpop.f32.mrf.mxu1 }
 0x40f   :  { %v633_v23 = vpack.c.bf16 %v556_v22, %v556_v22 }
 0x411   :  { %v713_v26 = vunpack.c.l.b16 %v633_v23 }
 0x413   :  { %v722_v28 = vpack.c.b16 %v713_v26, %v712_v25 }
 0x415   :  { %818 = vmatmul.bf16.gmra.mxu3 %v722_v28  ;;  %v954_v28 = vpop.f32.mrf.mxu0 }
 0x416   :  { %v559_v27 = vpop.f32.mrf.mxu1 }
 0x417   :  { %v634_v18 = vpack.c.bf16 %v559_v27, %v559_v27 }
 0x419   :  { %598 = vmatmul.bf16.gmra.mxu1 %v2992_v31  ;;  %v714_v30 = vunpack.c.l.b16 %v634_v18 }
 0x41e   :  { %v561_v21 = vpop.f32.mrf.mxu1 }
 0x41f   :  { %v635_v32 = vpack.c.bf16 %v561_v21, %v561_v21 }
 0x421   :  { %v715_v34 = vunpack.c.l.b16 %v635_v32 }
 0x423   :  { %v723_v35 = vpack.c.b16 %v715_v34, %v714_v30 }
 0x425   :  { %823 = vmatmul.bf16.gmra.mxu3 %v723_v35 }
 0x426   :  { %v564_v37 = vpop.f32.mrf.mxu1 }
 0x427   :  { %v636_v12 = vpack.c.bf16 %v564_v37, %v564_v37 }
 0x429   :  { %v1006_v33 = vunpack.c.l.b16 %v636_v12 }
 0x42e   :  { %v566_v40 = vpop.f32.mrf.mxu1 }
 0x42f   :  { %v637_v15 = vpack.c.bf16 %v566_v40, %v566_v40 }
 0x431   :  { %v1007_v41 = vunpack.c.l.b16 %v637_v15 }
 0x433   :  { %v1022_v45 = vpack.c.b16 %v1007_v41, %v1006_v33 }
 0x435   :  { %1094 = vmatmul.bf16.vlgmr.msrb.gmra.mxu2 %v1022_v45 }
 0x436   :  { %v569_v46 = vpop.f32.mrf.mxu1 }
 0x437   :  { %v638_v9 = vpack.c.bf16 %v569_v46, %v569_v46 }
 0x438   :  { %v3496_v6 = vpop.f32.mrf.mxu3 }
 0x439   :  { %v1008_v39 = vunpack.c.l.b16 %v638_v9 }
 0x43e   :  { %v571_v36 = vpop.f32.mrf.mxu1 }
 0x43f   :  { %v639_v48 = vpack.c.bf16 %v571_v36, %v571_v36 }
 0x440   :  { %v3500_v49 = vpop.f32.mrf.mxu3 }
 0x441   :  { %v1009_v0 = vunpack.c.l.b16 %v639_v48 }
 0x443   :  { %v1023_v50 = vpack.c.b16 %v1009_v0, %v1008_v39  ;;  %v935_v0 = vadd.f32 %v3492_v38, %v3496_v6 }
 0x445   :  { %1099 = vmatmul.bf16.gmra.mxu2 %v1023_v50 }
 0x446   :  { %v574_v42 = vpop.f32.mrf.mxu1 }
 0x447   :  { %v640_v60 = vpack.c.bf16 %v574_v42, %v574_v42 }
 0x448   :  { %v3504_v51 = vpop.f32.mrf.mxu3 }
 0x449   :  { %v1010_v54 = vunpack.c.l.b16 %v640_v60 }
 0x44e   :  { %v576_v44 = vpop.f32.mrf.mxu1 }
 0x44f   :  { %v641_v63 = vpack.c.bf16 %v576_v44, %v576_v44  ;;  %v940_v44 = vadd.f32 %v3498_v47, %v3504_v51 }
 0x450   :  { %v3508_v53 = vpop.f32.mrf.mxu3 }
 0x451   :  { %v1011_v55 = vunpack.c.l.b16 %v641_v63 }
 0x453   :  { %v1024_v58 = vpack.c.b16 %v1011_v55, %v1010_v54 }
 0x455   :  { %1104 = vmatmul.bf16.gmra.mxu2 %v1024_v58 }
 0x456   :  { %v579_v59 = vpop.f32.mrf.mxu1 }
 0x457   :  { %v642_v62 = vpack.c.bf16 %v579_v59, %v579_v59 }
 0x458   :  { %v799_v56 = vpop.f32.mrf.mxu3 }
 0x459   :  { %v1012_v5 = vunpack.c.l.b16 %v642_v62  ;;  %v945_v58 = vadd.f32 %v3506_v52, %v799_v56 }
 0x45e   :  { %v581_v1 = vpop.f32.mrf.mxu1 }
 0x45f   :  { %v643_v2 = vpack.c.bf16 %v581_v1, %v581_v1 }
 0x460   :  { %v3512_v4 = vpop.f32.mrf.mxu3 }
 0x461   :  { %v1013_v7 = vunpack.c.l.b16 %v643_v2 }
 0x463   :  { %v1025_v8 = vpack.c.b16 %v1013_v7, %v1012_v5 }
 0x465   :  { %1109 = vmatmul.bf16.gmra.mxu2 %v1025_v8  ;;  %v956_v8 = vpop.f32.mrf.mxu0 }
 0x466   :  { %v584_v11 = vpop.f32.mrf.mxu1 }
 0x467   :  { %v644_v14 = vpack.c.bf16 %v584_v11, %v584_v11 }
 0x468   :  { %v804_v13 = vpop.f32.mrf.mxu3 }
 0x469   :  { %v1014_v22 = vunpack.c.l.b16 %v644_v14  ;;  %v950_v38 = vadd.f32 %v949_v10, %v804_v13 }
 0x46d   :  { %v959_v14 = vpop.f32.mrf.mxu0 }
 0x46e   :  { %v586_v17 = vpop.f32.mrf.mxu1 }
 0x46f   :  { %v645_v19 = vpack.c.bf16 %v586_v17, %v586_v17 }
 0x470   :  { %v3516_v20 = vpop.f32.mrf.mxu3 }
 0x471   :  { %v1015_v23 = vunpack.c.l.b16 %v645_v19 }
 0x473   :  { %v1026_v25 = vpack.c.b16 %v1015_v23, %v1014_v22 }
 0x475   :  { %1114 = vmatmul.bf16.gmra.mxu2 %v1026_v25  ;;  %v961_v22 = vpop.f32.mrf.mxu0 }
 0x476   :  { %v589_v26 = vpop.f32.mrf.mxu1 }
 0x477   :  { %v646_v24 = vpack.c.bf16 %v589_v26, %v589_v26 }
 0x478   :  { %v809_v29 = vpop.f32.mrf.mxu3 }
 0x479   :  { %v955_v31 = vadd.f32 %v954_v28, %v809_v29  ;;  %v1016_v21 = vunpack.c.l.b16 %v646_v24 }
 0x47d   :  { %v964_v23 = vpop.f32.mrf.mxu0 }
 0x47e   :  { %v591_v27 = vpop.f32.mrf.mxu1 }
 0x47f   :  { %v647_v18 = vpack.c.bf16 %v591_v27, %v591_v27 }
 0x480   :  { %v811_v5 = vpop.f32.mrf.mxu3 }
 0x481   :  { %v1017_v32 = vunpack.c.l.b16 %v647_v18 }
 0x483   :  { %v1027_v30 = vpack.c.b16 %v1017_v32, %v1016_v21 }
 0x485   :  { %1119 = vmatmul.bf16.gmra.mxu2 %v1027_v30  ;;  %v966_v10 = vpop.f32.mrf.mxu0 }
 0x486   :  { %v594_v34 = vpop.f32.mrf.mxu1 }
 0x487   :  { %v648_v35 = vpack.c.bf16 %v594_v34, %v594_v34 }
 0x488   :  { %v814_v11 = vpop.f32.mrf.mxu3 }
 0x489   :  { %v1018_v40 = vunpack.c.l.b16 %v648_v35 }
 0x48d   :  { %v969_v24 = vpop.f32.mrf.mxu0 }
 0x48e   :  { %v596_v37 = vpop.f32.mrf.mxu1 }
 0x48f   :  { %v649_v12 = vpack.c.bf16 %v596_v37, %v596_v37  ;;  %v1151_v37 = vperm.slane %v3334_v57, 2  ;;  %v952_v57 = vadd.f32 %v3514_v16, %v3516_v20  ;;  %v942_v16 = vadd.f32 %v3502_v3, %v3508_v53 }
 0x490   :  { %v816_v19 = vpop.f32.mrf.mxu3 }
 0x491   :  { %v1019_v15 = vunpack.c.l.b16 %v649_v12 }
 0x493   :  { %v1028_v33 = vpack.c.b16 %v1019_v15, %v1018_v40  ;;  %v962_v15 = vadd.f32 %v961_v22, %v816_v19 }
 0x495   :  { %1124 = vmatmul.bf16.gmra.mxu2 %v1028_v33  ;;  %v971_v30 = vpop.f32.mrf.mxu0 }
 0x496   :  { %v599_v41 = vpop.f32.mrf.mxu1 }
 0x497   :  { %v650_v45 = vpack.c.bf16 %v599_v41, %v599_v41 }
 0x498   :  { %v819_v56 = vpop.f32.mrf.mxu3 }
 0x499   :  { %v1020_v36 = vunpack.c.l.b16 %v650_v45  ;;  %v965_v34 = vadd.f32 %v964_v23, %v819_v56 }
 0x49e   :  { %v601_v46 = vpop.f32.mrf.mxu1 }
 0x49f   :  { %v651_v9 = vpack.c.bf16 %v601_v46, %v601_v46  ;;  %v960_v46 = vadd.f32 %v959_v14, %v814_v11 }
 0x4a0   :  { %v821_v26 = vpop.f32.mrf.mxu3 }
 0x4a1   :  { %v1021_v48 = vunpack.c.l.b16 %v651_v9  ;;  %v967_v32 = vadd.f32 %v966_v10, %v821_v26 }
 0x4a3   :  { %v1029_v39 = vpack.c.b16 %v1021_v48, %v1020_v36 }
 0x4a5   :  { %1129 = vmatmul.bf16.gmra.mxu2 %v1029_v39  ;;  %v957_v39 = vadd.f32 %v956_v8, %v811_v5  ;;  %v947_v5 = vadd.f32 %v3510_v61, %v3512_v4  ;;  %v937_v4 = vadd.f32 %v3494_v43, %v3500_v49 }
 0x4a8   :  { %v824_v29 = vpop.f32.mrf.mxu3 }
 0x4a9   :  { %v970_v18 = vadd.f32 %v969_v24, %v824_v29 }
 0x4b0   :  { %v826_v21 = vpop.f32.mrf.mxu3 }
 0x4b1   :  { %v972_v35 = vadd.f32 %v971_v30, %v826_v21 }
 0x4b8   :  { %v1095_v50 = vpop.f32.mrf.mxu2 }
 0x4b9   :  { %v3520_v42 = vadd.f32 %v1095_v50, %v935_v0 }
 0x4c0   :  { %v3522_v60 = vpop.f32.mrf.mxu2 }
 0x4c1   :  { %v1136_v29 = vadd.f32 %v3522_v60, %v937_v4  ;;  %v3017_v60 = vld [vmem:[%s3834_s2 + $0x180] sm:$0xff] }
 0x4c8   :  { %v1100_v63 = vpop.f32.mrf.mxu2 }
 0x4c9   :  { %v3526_v54 = vadd.f32 %v1100_v63, %v940_v44 }
 0x4d0   :  { %v3528_v55 = vpop.f32.mrf.mxu2 }
 0x4d8   :  { %v1105_v59 = vpop.f32.mrf.mxu2 }
 0x4d9   :  { %v3531_v62 = vadd.f32 %v1105_v59, %v945_v58 }
 0x4e0   :  { %v3533_v1 = vpop.f32.mrf.mxu2 }
 0x4e8   :  { %v1110_v6 = vpop.f32.mrf.mxu2 }
 0x4e9   :  { %v3535_v2 = vadd.f32 %v1110_v6, %v950_v38 }
 0x4eb   :  { %v1158_v20 = vadd.f32 %v1151_v37, %v3535_v2  ;;  %v1154_v2 = vadd.f32 %v1151_v37, %v3526_v54  ;;  %v3018_v54 = vld [vmem:[%s3834_s2 + $0x188] sm:$0xff] }
 0x4f0   :  { %v1112_v7 = vpop.f32.mrf.mxu2 }
 0x4f1   :  { %v1142_v22 = vadd.f32 %v1112_v7, %v952_v57 }
 0x4f3   :  { %v1159_v23 = vadd.f32 %v1151_v37, %v1142_v22 }
 0x4f8   :  { %v1115_v47 = vpop.f32.mrf.mxu2 }
 0x4f9   :  { %v1143_v51 = vadd.f32 %v1115_v47, %v955_v31 }
 0x4fb   :  { %v1160_v8 = vadd.f32 %v1151_v37, %v1143_v51  ;;  %v1174_v51 = vmax.f32 %v1158_v20, 0.0 }
 0x4fd   :  { %v1176_v7 = vmax.f32 %v1160_v8, 0.0 }
 0x500   :  { %v1117_v17 = vpop.f32.mrf.mxu2 }
 0x501   :  { %v1144_v58 = vadd.f32 %v1117_v17, %v957_v39  ;;  %v1140_v17 = vadd.f32 %v3533_v1, %v947_v5  ;;  %v1156_v1 = vadd.f32 %v1151_v37, %v3531_v62  ;;  %v3028_v39 = vld [vmem:[%s3834_s2 + $0x1d8] sm:$0xff] }
 0x503   :  { %v1161_v11 = vadd.f32 %v1151_v37, %v1144_v58  ;;  %v1157_v10 = vadd.f32 %v1151_v37, %v1140_v17  ;;  %v3025_v58 = vld [vmem:[%s3834_s2 + $0x1c0] sm:$0xff] }
 0x505   :  { %v1173_v3 = vmax.f32 %v1157_v10, 0.0 }
 0x508   :  { %v1120_v52 = vpop.f32.mrf.mxu2 }
 0x509   :  { %v1145_v0 = vadd.f32 %v1120_v52, %v960_v46  ;;  %v3031_v46 = vld [vmem:[%s3834_s2 + $0x1f0] sm:$0xff] }
 0x50b   :  { %v1162_v47 = vadd.f32 %v1151_v37, %v1145_v0 }
 0x50d   :  { %v1178_v52 = vmax.f32 %v1162_v47, 0.0 }
 0x510   :  { %v1122_v25 = vpop.f32.mrf.mxu2 }
 0x511   :  { %v1146_v9 = vadd.f32 %v1122_v25, %v962_v15  ;;  %v1177_v25 = vmax.f32 %v1161_v11, 0.0 }
 0x513   :  { %v1163_v59 = vadd.f32 %v1151_v37, %v1146_v9  ;;  %v1188_v61 = vpack.c.bf16 %v1177_v25, %v1176_v7  ;;  %v3030_v9 = vld [vmem:[%s3834_s2 + $0x1e8] sm:$0xff] }
 0x515   :  { %v1179_v14 = vmax.f32 %v1163_v59, 0.0 }
 0x517   :  { %v1189_v26 = vpack.c.bf16 %v1179_v14, %v1178_v52 }
 0x518   :  { %v1125_v28 = vpop.f32.mrf.mxu2 }
 0x519   :  { %v1147_v33 = vadd.f32 %v1125_v28, %v965_v34  ;;  %v1138_v28 = vadd.f32 %v3528_v55, %v942_v16  ;;  %v1153_v55 = vadd.f32 %v1151_v37, %v1136_v29  ;;  %v3020_v34 = vld [vmem:[%s3834_s2 + $0x198] sm:$0xff] }
 0x51b   :  { %v1164_v50 = vadd.f32 %v1151_v37, %v1147_v33  ;;  %v1155_v24 = vadd.f32 %v1151_v37, %v1138_v28  ;;  %v1169_v43 = vmax.f32 %v1153_v55, 0.0 }
 0x51d   :  { %v1180_v19 = vmax.f32 %v1164_v50, 0.0  ;;  %v3027_v50 = vld [vmem:[%s3834_s2 + $0x1d0] sm:$0xff] }
 0x520   :  { %v1127_v13 = vpop.f32.mrf.mxu2 }
 0x521   :  { %v1148_v12 = vadd.f32 %v1127_v13, %v967_v32  ;;  %v1175_v13 = vmax.f32 %v1159_v23, 0.0  ;;  %v1152_v32 = vadd.f32 %v1151_v37, %v3520_v42  ;;  %v3019_v42 = vld [vmem:[%s3834_s2 + $0x190] sm:$0xff] }
 0x523   :  { %v1165_v36 = vadd.f32 %v1151_v37, %v1148_v12  ;;  %v1187_v53 = vpack.c.bf16 %v1175_v13, %v1174_v51  ;;  %v1168_v62 = vmax.f32 %v1152_v32, 0.0  ;;  %v3023_v12 = vld [vmem:[%s3834_s2 + $0x1b0] sm:$0xff] }
 0x525   :  { %v1181_v38 = vmax.f32 %v1165_v36, 0.0  ;;  %v1184_v30 = vpack.c.bf16 %v1169_v43, %v1168_v62 }
 0x527   :  { %v1190_v56 = vpack.c.bf16 %v1181_v38, %v1180_v19 }
 0x528   :  { %v1130_v27 = vpop.f32.mrf.mxu2 }
 0x529   :  { %v1149_v31 = vadd.f32 %v1130_v27, %v970_v18  ;;  %v1172_v27 = vmax.f32 %v1156_v1, 0.0  ;;  %v1171_v18 = vmax.f32 %v1155_v24, 0.0 }
 0x52b   :  { %v1166_v41 = vadd.f32 %v1151_v37, %v1149_v31  ;;  %v1186_v21 = vpack.c.bf16 %v1173_v3, %v1172_v27  ;;  %v1170_v31 = vmax.f32 %v1154_v2, 0.0 }
 0x52d   :  { %v1182_v44 = vmax.f32 %v1166_v41, 0.0  ;;  %v1185_v49 = vpack.c.bf16 %v1171_v18, %v1170_v31  ;;  %v3032_v41 = vld [vmem:[%s3834_s2 + $0x1f8] sm:$0xff] }
 0x52e   :  { %1381 = vmatpush.bf16.msra.mxu0 %v3032_v41 }
 0x530   :  { %v1132_v40 = vpop.f32.mrf.mxu2 }
 0x531   :  { %v1150_v45 = vadd.f32 %v1132_v40, %v972_v35  ;;  %v3021_v35 = vld [vmem:[%s3834_s2 + $0x1a0] sm:$0xff]  ;;  %v3024_v40 = vld [vmem:[%s3834_s2 + $0x1b8] sm:$0xff] }
 0x532   :  { %1382 = vmatpush.bf16.msra.mxu0 %v3031_v46 }
 0x533   :  { %v1167_v48 = vadd.f32 %v1151_v37, %v1150_v45  ;;  %v3022_v37 = vld [vmem:[%s3834_s2 + $0x1a8] sm:$0xff] }
 0x535   :  { %v1183_v63 = vmax.f32 %v1167_v48, 0.0  ;;  %v3029_v48 = vld [vmem:[%s3834_s2 + $0x1e0] sm:$0xff] }
 0x536   :  { %1383 = vmatpush.bf16.msra.mxu0 %v3030_v9 }
 0x537   :  { %v1191_v6 = vpack.c.bf16 %v1183_v63, %v1182_v44  ;;  %v3026_v44 = vld [vmem:[%s3834_s2 + $0x1c8] sm:$0xff] }
 0x539   :  { %1256 = vmatpush.bf16.msrb.mxu3 %v1191_v6 }
 0x53a   :  { %1384 = vmatpush.bf16.msra.mxu0 %v3029_v48 }
 0x53d   :  { %1257 = vmatpush.bf16.msrb.mxu3 %v1190_v56 }
 0x53e   :  { %1385 = vmatpush.bf16.msra.mxu0 %v3028_v39  ;;  %v3033_v39 = vld [vmem:[%s3834_s2 + $0x200] sm:$0xff] }
 0x541   :  { %1258 = vmatpush.bf16.msrb.mxu3 %v1189_v26 }
 0x542   :  { %1386 = vmatpush.bf16.msra.mxu0 %v3027_v50  ;;  %v3035_v50 = vld [vmem:[%s3834_s2 + $0x210] sm:$0xff] }
 0x545   :  { %1259 = vmatpush.bf16.msrb.mxu3 %v1188_v61 }
 0x546   :  { %1387 = vmatpush.bf16.msra.mxu0 %v3026_v44  ;;  %v3036_v44 = vld [vmem:[%s3834_s2 + $0x218] sm:$0xff] }
 0x549   :  { %1260 = vmatpush.bf16.msrb.mxu3 %v1187_v53 }
 0x54a   :  { %1388 = vmatpush.bf16.msra.mxu0 %v3025_v58  ;;  %v3038_v58 = vld [vmem:[%s3834_s2 + $0x228] sm:$0xff] }
 0x54d   :  { %1261 = vmatpush.bf16.msrb.mxu3 %v1186_v21 }
 0x551   :  { %1262 = vmatpush.bf16.msrb.mxu3 %v1185_v49 }
 0x555   :  { %1263 = vmatpush.bf16.msrb.mxu3 %v1184_v30 }
 0x558   :  { %1264 = vmatmul.bf16.vlgmr.msrb.gmra.mxu3 %v3017_v60 }
 0x568   :  { %1269 = vmatmul.bf16.gmra.mxu3 %v3018_v54 }
 0x578   :  { %1274 = vmatmul.bf16.gmra.mxu3 %v3019_v42 }
 0x588   :  { %1279 = vmatmul.bf16.gmra.mxu3 %v3020_v34 }
 0x598   :  { %1284 = vmatmul.bf16.gmra.mxu3 %v3021_v35 }
 0x5a8   :  { %1289 = vmatmul.bf16.gmra.mxu3 %v3022_v37 }
 0x5b8   :  { %1294 = vmatmul.bf16.gmra.mxu3 %v3023_v12 }
 0x5c8   :  { %1299 = vmatmul.bf16.gmra.mxu3 %v3024_v40 }
 0x5db   :  { %v1265_v15 = vpop.f32.mrf.mxu3 }
 0x5e3   :  { %v1267_v33 = vpop.f32.mrf.mxu3 }
 0x5eb   :  { %v1270_v45 = vpop.f32.mrf.mxu3 }
 0x5f3   :  { %v1272_v36 = vpop.f32.mrf.mxu3 }
 0x5fb   :  { %v1275_v0 = vpop.f32.mrf.mxu3 }
 0x603   :  { %v1277_v63 = vpop.f32.mrf.mxu3 }
 0x60b   :  { %v1280_v59 = vpop.f32.mrf.mxu3 }
 0x613   :  { %v1282_v38 = vpop.f32.mrf.mxu3 }
 0x61b   :  { %v1285_v6 = vpop.f32.mrf.mxu3 }
 0x61c   :  { %v1305_v47 = vmax.f32 %v1265_v15, %v1285_v6  ;;  %v3040_v6 = vld [vmem:[%s3834_s2 + $0x238] sm:$0xff] }
 0x623   :  { %v1287_v57 = vpop.f32.mrf.mxu3 }
 0x624   :  { %v1306_v19 = vmax.f32 %v1267_v33, %v1287_v57  ;;  %v3047_v57 = vld [vmem:[%s3834_s2 + $0x270] sm:$0xff] }
 0x626   :  { %v1313_v22 = vpack.c.bf16 %v1306_v19, %v1305_v47  ;;  %v3046_v47 = vld [vmem:[%s3834_s2 + $0x268] sm:$0xff]  ;;  %v3045_v19 = vld [vmem:[%s3834_s2 + $0x260] sm:$0xff] }
 0x628   :  { %1389 = vmatmul.bf16.vlgmr.msra.gmra.mxu0 %v1313_v22  ;;  %v3041_v22 = vld [vmem:[%s3834_s2 + $0x240] sm:$0xff] }
 0x62b   :  { %v1290_v11 = vpop.f32.mrf.mxu3 }
 0x62c   :  { %v1307_v56 = vmax.f32 %v1270_v45, %v1290_v11 }
 0x633   :  { %v1292_v14 = vpop.f32.mrf.mxu3 }
 0x634   :  { %v1308_v5 = vmax.f32 %v1272_v36, %v1292_v14 }
 0x636   :  { %v1314_v8 = vpack.c.bf16 %v1308_v5, %v1307_v56 }
 0x638   :  { %1394 = vmatmul.bf16.gmra.mxu0 %v1314_v8  ;;  %v3042_v8 = vld [vmem:[%s3834_s2 + $0x248] sm:$0xff] }
 0x63b   :  { %v1295_v52 = vpop.f32.mrf.mxu3 }
 0x63c   :  { %v1309_v23 = vmax.f32 %v1275_v0, %v1295_v52  ;;  %v3034_v0 = vld [vmem:[%s3834_s2 + $0x208] sm:$0xff] }
 0x643   :  { %v1297_v17 = vpop.f32.mrf.mxu3 }
 0x644   :  { %v1310_v25 = vmax.f32 %v1277_v63, %v1297_v17  ;;  %v3037_v63 = vld [vmem:[%s3834_s2 + $0x220] sm:$0xff] }
 0x646   :  { %v1315_v26 = vpack.c.bf16 %v1310_v25, %v1309_v23 }
 0x648   :  { %1399 = vmatmul.bf16.gmra.mxu0 %v1315_v26 }
 0x64b   :  { %v1300_v16 = vpop.f32.mrf.mxu3 }
 0x64c   :  { %v1311_v7 = vmax.f32 %v1280_v59, %v1300_v16  ;;  %v3039_v59 = vld [vmem:[%s3834_s2 + $0x230] sm:$0xff] }
 0x653   :  { %v1302_v20 = vpop.f32.mrf.mxu3 }
 0x654   :  { %v1312_v28 = vmax.f32 %v1282_v38, %v1302_v20  ;;  %v3048_v38 = vld [vmem:[%s3834_s2 + $0x278] sm:$0xff] }
 0x655   :  { %1829 = vmatpush.bf16.msra.mxu3 %v3048_v38  ;;  %v3054_v38 = vld [vmem:[%s3834_s2 + $0x2a8] sm:$0xff] }
 0x656   :  { %v1316_v10 = vpack.c.bf16 %v1312_v28, %v1311_v7  ;;  %v3043_v7 = vld [vmem:[%s3834_s2 + $0x250] sm:$0xff] }
 0x658   :  { %1404 = vmatmul.bf16.gmra.mxu0 %v1316_v10 }
 0x659   :  { %1830 = vmatpush.bf16.msra.mxu3 %v3047_v57  ;;  %v3053_v57 = vld [vmem:[%s3834_s2 + $0x2a0] sm:$0xff] }
 0x65d   :  { %1831 = vmatpush.bf16.msra.mxu3 %v3046_v47 }
 0x661   :  { %1832 = vmatpush.bf16.msra.mxu3 %v3045_v19 }
 0x6a5   :  { %v1390_v13 = vpop.f32.mrf.mxu0 }
 0x6ad   :  { %v1392_v61 = vpop.f32.mrf.mxu0 }
 0x6ae   :  { %v3109_v24 = vpack.i.bf16 %v1392_v61, %v1390_v13 }
 0x6b5   :  { %v1395_v4 = vpop.f32.mrf.mxu0 }
 0x6bd   :  { %v1397_v1 = vpop.f32.mrf.mxu0 }
 0x6be   :  { %v3104_v51 = vpack.i.bf16 %v1397_v1, %v1395_v4 }
 0x6c0   :  { %3105 = vrot.lane.b32.xlu1 %v3104_v51, %s3117_s14 }
 0x6c5   :  { %v1400_v29 = vpop.f32.mrf.mxu0 }
 0x6c8   :  { %3110 = vrot.lane.b32.xlu1 %v3109_v24, %s3117_s14 }
 0x6cd   :  { %v1402_v3 = vpop.f32.mrf.mxu0 }
 0x6ce   :  { %v3099_v55 = vpack.i.bf16 %v1402_v3, %v1400_v29 }
 0x6d5   :  { %v1405_v53 = vpop.f32.mrf.mxu0 }
 0x6dd   :  { %v1407_v2 = vpop.f32.mrf.mxu0 }
 0x6de   :  { %v3094_v27 = vpack.i.bf16 %v1407_v2, %v1405_v53 }
 0x6e0   :  { %3095 = vrot.lane.b32.xlu0 %v3094_v27, %s3117_s14 }
 0x6e8   :  { %3100 = vrot.lane.b32.xlu0 %v3099_v55, %s3117_s14  ;;  %v3050_v55 = vld [vmem:[%s3834_s2 + $0x288] sm:$0xff] }
 0x732   :  { %v3106_v18 = vpop.permute.xlu1 %3105 }
 0x733   :  { %v3108_v30 = vunpack.i.h.bf16 %v3106_v18  ;;  %v3107_v54 = vunpack.i.l.bf16 %v3106_v18  ;;  %v3049_v18 = vld [vmem:[%s3834_s2 + $0x280] sm:$0xff] }
 0x735   :  { %v1445_v40 = vmax.f32 %v1397_v1, %v3108_v30  ;;  %v1444_v15 = vmax.f32 %v1395_v4, %v3107_v54  ;;  %v3052_v4 = vld [vmem:[%s3834_s2 + $0x298] sm:$0xff]  ;;  %v3051_v1 = vld [vmem:[%s3834_s2 + $0x290] sm:$0xff] }
 0x736   :  { %1744 = vmatpush.bf16.msrb.mxu0 %v3052_v4 }
 0x737   :  { %v1451_v36 = vpack.c.bf16 %v1445_v40, %v1444_v15 }
 0x73a   :  { %v3111_v35 = vpop.permute.xlu1 %3110  ;;  %1745 = vmatpush.bf16.msrb.mxu0 %v3051_v1 }
 0x73b   :  { %v3113_v33 = vunpack.i.h.bf16 %v3111_v35  ;;  %v3112_v41 = vunpack.i.l.bf16 %v3111_v35 }
 0x73d   :  { %v1443_v46 = vmax.f32 %v1392_v61, %v3113_v33  ;;  %v1442_v9 = vmax.f32 %v1390_v13, %v3112_v41 }
 0x73e   :  { %1746 = vmatpush.bf16.msrb.mxu0 %v3050_v55 }
 0x73f   :  { %v1450_v48 = vpack.c.bf16 %v1443_v46, %v1442_v9 }
 0x742   :  { %1747 = vmatpush.bf16.msrb.mxu0 %v3049_v18 }
 0x752   :  { %v3096_v21 = vpop.permute.xlu0 %3095 }
 0x753   :  { %v3098_v32 = vunpack.i.h.bf16 %v3096_v21  ;;  %v3097_v31 = vunpack.i.l.bf16 %v3096_v21 }
 0x755   :  { %v1449_v43 = vmax.f32 %v1407_v2, %v3098_v32  ;;  %v1448_v49 = vmax.f32 %v1405_v53, %v3097_v31 }
 0x757   :  { %v1453_v62 = vpack.c.bf16 %v1449_v43, %v1448_v49 }
 0x759   :  { %1579 = vmatpush.bf16.msra.mxu2 %v1453_v62 }
 0x75a   :  { %v3101_v60 = vpop.permute.xlu0 %3100 }
 0x75b   :  { %v3103_v42 = vunpack.i.h.bf16 %v3101_v60  ;;  %v3102_v34 = vunpack.i.l.bf16 %v3101_v60 }
 0x75d   :  { %v1447_v37 = vmax.f32 %v1402_v3, %v3103_v42  ;;  %v1446_v12 = vmax.f32 %v1400_v29, %v3102_v34  ;;  %v3044_v3 = vld [vmem:[%s3834_s2 + $0x258] sm:$0xff] }
 0x75f   :  { %v1452_v45 = vpack.c.bf16 %v1447_v37, %v1446_v12 }
 0x761   :  { %1580 = vmatpush.bf16.msra.mxu2 %v1452_v45 }
 0x765   :  { %1581 = vmatpush.bf16.msra.mxu2 %v1451_v36 }
 0x769   :  { %1582 = vmatpush.bf16.msra.mxu2 %v1450_v48  ;;  %v3056_v48 = vld [vmem:[%s3834_s2 + $0x2b8] sm:$0xff] }
 0x76a   :  { %1922 = vmatpush.bf16.msra.mxu0 %v3056_v48 }
 0x76c   :  { %2745 = vmatmul.msk.bf16.vlgmr.msra.gmra.mxu2 %vm1538_vm4, %v3033_v39  ;;  %v3055_v39 = vld [vmem:[%s3834_s2 + $0x2b0] sm:$0xff] }
 0x76e   :  { %1923 = vmatpush.bf16.msra.mxu0 %v3055_v39 }
 0x772   :  { %1924 = vmatpush.bf16.msra.mxu0 %v3054_v38 }
 0x776   :  { %1925 = vmatpush.bf16.msra.mxu0 %v3053_v57 }
 0x77c   :  { %2746 = vmatmul.msk.bf16.gmra.mxu2 %vm1538_vm4, %v3034_v0 }
 0x78c   :  { %2747 = vmatmul.msk.bf16.gmra.mxu2 %vm1538_vm4, %v3035_v50 }
 0x79c   :  { %2748 = vmatmul.msk.bf16.gmra.mxu2 %vm1538_vm4, %v3036_v44 }
 0x7ac   :  { %2749 = vmatmul.msk.bf16.gmra.mxu2 %vm1538_vm4, %v3037_v63 }
 0x7bc   :  { %2750 = vmatmul.msk.bf16.gmra.mxu2 %vm1538_vm4, %v3038_v58 }
 0x7cc   :  { %2751 = vmatmul.msk.bf16.gmra.mxu2 %vm1538_vm4, %v3039_v59 }
 0x7dc   :  { %2752 = vmatmul.msk.bf16.gmra.mxu2 %vm1538_vm4, %v3040_v6 }
 0x7ec   :  { %2753 = vmatmul.msk.bf16.gmra.mxu2 %vm1538_vm4, %v3041_v22 }
 0x7ef   :  { %v1584_v11 = vpop.f32.mrf.mxu2 }
 0x7f0   :  { %v1644_v14 = vpack.c.bf16 %v1584_v11, %v1584_v11 }
 0x7f2   :  { %v1777_v52 = vunpack.c.l.b16 %v1644_v14 }
 0x7f7   :  { %v1586_v56 = vpop.f32.mrf.mxu2 }
 0x7f8   :  { %v1645_v5 = vpack.c.bf16 %v1586_v56, %v1586_v56 }
 0x7fa   :  { %v1778_v17 = vunpack.c.l.b16 %v1645_v5 }
 0x7fc   :  { %v1785_v23 = vpack.c.b16 %v1778_v17, %v1777_v52  ;;  %2754 = vmatmul.msk.bf16.gmra.mxu2 %vm1538_vm4, %v3042_v8 }
 0x7fe   :  { %2793 = vmatmul.msk.bf16.vlgmr.msra.gmra.mxu3 %vm1538_vm4, %v1785_v23 }
 0x7ff   :  { %v1589_v25 = vpop.f32.mrf.mxu2 }
 0x800   :  { %v1646_v26 = vpack.c.bf16 %v1589_v25, %v1589_v25 }
 0x802   :  { %v1779_v28 = vunpack.c.l.b16 %v1646_v26 }
 0x807   :  { %v1591_v16 = vpop.f32.mrf.mxu2 }
 0x808   :  { %v1647_v20 = vpack.c.bf16 %v1591_v16, %v1591_v16 }
 0x80a   :  { %v1780_v10 = vunpack.c.l.b16 %v1647_v20 }
 0x80c   :  { %v1786_v13 = vpack.c.b16 %v1780_v10, %v1779_v28  ;;  %2755 = vmatmul.msk.bf16.gmra.mxu2 %vm1538_vm4, %v3043_v7 }
 0x80e   :  { %2794 = vmatmul.msk.bf16.gmra.mxu3 %vm1538_vm4, %v1786_v13 }
 0x80f   :  { %v1594_v61 = vpop.f32.mrf.mxu2 }
 0x810   :  { %v1648_v51 = vpack.c.bf16 %v1594_v61, %v1594_v61 }
 0x812   :  { %v1781_v53 = vunpack.c.l.b16 %v1648_v51 }
 0x817   :  { %v1596_v29 = vpop.f32.mrf.mxu2 }
 0x818   :  { %v1649_v24 = vpack.c.bf16 %v1596_v29, %v1596_v29 }
 0x81a   :  { %v1782_v2 = vunpack.c.l.b16 %v1649_v24 }
 0x81c   :  { %v1787_v27 = vpack.c.b16 %v1782_v2, %v1781_v53  ;;  %2756 = vmatmul.msk.bf16.gmra.mxu2 %vm1538_vm4, %v3044_v3 }
 0x81e   :  { %2795 = vmatmul.msk.bf16.gmra.mxu3 %vm1538_vm4, %v1787_v27 }
 0x81f   :  { %v1599_v21 = vpop.f32.mrf.mxu2 }
 0x820   :  { %v1650_v32 = vpack.c.bf16 %v1599_v21, %v1599_v21 }
 0x822   :  { %v1783_v49 = vunpack.c.l.b16 %v1650_v32 }
 0x827   :  { %v1601_v31 = vpop.f32.mrf.mxu2 }
 0x828   :  { %v1651_v43 = vpack.c.bf16 %v1601_v31, %v1601_v31 }
 0x82a   :  { %v1784_v62 = vunpack.c.l.b16 %v1651_v43 }
 0x82c   :  { %v1788_v30 = vpack.c.b16 %v1784_v62, %v1783_v49 }
 0x82e   :  { %2796 = vmatmul.msk.bf16.gmra.mxu3 %vm1538_vm4, %v1788_v30 }
 0x82f   :  { %v1604_v60 = vpop.f32.mrf.mxu2 }
 0x830   :  { %v1652_v54 = vpack.c.bf16 %v1604_v60, %v1604_v60 }
 0x832   :  { %v1692_v35 = vunpack.c.l.b16 %v1652_v54 }
 0x837   :  { %v1606_v42 = vpop.f32.mrf.mxu2 }
 0x838   :  { %v1653_v34 = vpack.c.bf16 %v1606_v42, %v1606_v42 }
 0x83a   :  { %v1693_v37 = vunpack.c.l.b16 %v1653_v34 }
 0x83c   :  { %v1700_v12 = vpack.c.b16 %v1693_v37, %v1692_v35 }
 0x83e   :  { %2773 = vmatmul.msk.bf16.vlgmr.msrb.gmra.mxu0 %vm1538_vm4, %v1700_v12 }
 0x83f   :  { %v1609_v40 = vpop.f32.mrf.mxu2 }
 0x840   :  { %v1654_v15 = vpack.c.bf16 %v1609_v40, %v1609_v40 }
 0x842   :  { %v1694_v45 = vunpack.c.l.b16 %v1654_v15 }
 0x847   :  { %v1611_v33 = vpop.f32.mrf.mxu2 }
 0x848   :  { %v1655_v41 = vpack.c.bf16 %v1611_v33, %v1611_v33 }
 0x84a   :  { %v1695_v46 = vunpack.c.l.b16 %v1655_v41  ;;  %v3704_v41 = vld [vmem:[%s3832_s1 + $0x88] sm:$0xff] }
 0x84c   :  { %v1701_v9 = vpack.c.b16 %v1695_v46, %v1694_v45  ;;  %v1955_v45 = vperm.slane %v3704_v41, 3 }
 0x84e   :  { %2774 = vmatmul.msk.bf16.gmra.mxu0 %vm1538_vm4, %v1701_v9 }
 0x84f   :  { %v1614_v36 = vpop.f32.mrf.mxu2 }
 0x850   :  { %v1656_v0 = vpack.c.bf16 %v1614_v36, %v1614_v36 }
 0x852   :  { %v1696_v63 = vunpack.c.l.b16 %v1656_v0 }
 0x857   :  { %v1616_v50 = vpop.f32.mrf.mxu2 }
 0x858   :  { %v1657_v44 = vpack.c.bf16 %v1616_v50, %v1616_v50 }
 0x85a   :  { %v1697_v58 = vunpack.c.l.b16 %v1657_v44 }
 0x85c   :  { %v1702_v59 = vpack.c.b16 %v1697_v58, %v1696_v63 }
 0x85e   :  { %2775 = vmatmul.msk.bf16.gmra.mxu0 %vm1538_vm4, %v1702_v59 }
 0x85f   :  { %v1619_v6 = vpop.f32.mrf.mxu2 }
 0x860   :  { %v1658_v47 = vpack.c.bf16 %v1619_v6, %v1619_v6 }
 0x862   :  { %v1698_v11 = vunpack.c.l.b16 %v1658_v47 }
 0x867   :  { %v1621_v19 = vpop.f32.mrf.mxu2 }
 0x868   :  { %v1659_v22 = vpack.c.bf16 %v1621_v19, %v1621_v19 }
 0x86a   :  { %v1699_v14 = vunpack.c.l.b16 %v1659_v22 }
 0x86c   :  { %v1703_v56 = vpack.c.b16 %v1699_v14, %v1698_v11 }
 0x86e   :  { %2776 = vmatmul.msk.bf16.gmra.mxu0 %vm1538_vm4, %v1703_v56 }
 0x86f   :  { %v1624_v5 = vpop.f32.mrf.mxu2 }
 0x870   :  { %v1660_v8 = vpack.c.bf16 %v1624_v5, %v1624_v5 }
 0x872   :  { %v1870_v23 = vunpack.c.l.b16 %v1660_v8 }
 0x877   :  { %v1626_v52 = vpop.f32.mrf.mxu2 }
 0x878   :  { %v1661_v17 = vpack.c.bf16 %v1626_v52, %v1626_v52 }
 0x87a   :  { %v1871_v25 = vunpack.c.l.b16 %v1661_v17 }
 0x87c   :  { %v1878_v26 = vpack.c.b16 %v1871_v25, %v1870_v23 }
 0x87e   :  { %2813 = vmatmul.msk.bf16.vlgmr.msra.gmra.mxu0 %vm1538_vm4, %v1878_v26 }
 0x87f   :  { %v1629_v16 = vpop.f32.mrf.mxu2 }
 0x880   :  { %v1662_v20 = vpack.c.bf16 %v1629_v16, %v1629_v16 }
 0x881   :  { %v1834_v43 = vpop.f32.mrf.mxu3 }
 0x882   :  { %v1872_v10 = vunpack.c.l.b16 %v1662_v20 }
 0x887   :  { %v1631_v7 = vpop.f32.mrf.mxu2 }
 0x888   :  { %v1663_v28 = vpack.c.bf16 %v1631_v7, %v1631_v7 }
 0x889   :  { %v1836_v12 = vpop.f32.mrf.mxu3 }
 0x88a   :  { %v1873_v13 = vunpack.c.l.b16 %v1663_v28 }
 0x88c   :  { %v1879_v61 = vpack.c.b16 %v1873_v13, %v1872_v10 }
 0x88e   :  { %2814 = vmatmul.msk.bf16.gmra.mxu0 %vm1538_vm4, %v1879_v61 }
 0x88f   :  { %v1634_v4 = vpop.f32.mrf.mxu2 }
 0x890   :  { %v1664_v1 = vpack.c.bf16 %v1634_v4, %v1634_v4 }
 0x891   :  { %v1839_v33 = vpop.f32.mrf.mxu3 }
 0x892   :  { %v1874_v24 = vunpack.c.l.b16 %v1664_v1 }
 0x897   :  { %v1636_v51 = vpop.f32.mrf.mxu2 }
 0x898   :  { %v1665_v29 = vpack.c.bf16 %v1636_v51, %v1636_v51 }
 0x899   :  { %v1841_v44 = vpop.f32.mrf.mxu3 }
 0x89a   :  { %v1875_v3 = vunpack.c.l.b16 %v1665_v29 }
 0x89c   :  { %v1880_v53 = vpack.c.b16 %v1875_v3, %v1874_v24 }
 0x89e   :  { %2815 = vmatmul.msk.bf16.gmra.mxu0 %vm1538_vm4, %v1880_v53 }
 0x89f   :  { %v1639_v2 = vpop.f32.mrf.mxu2 }
 0x8a0   :  { %v1666_v27 = vpack.c.bf16 %v1639_v2, %v1639_v2 }
 0x8a1   :  { %v1844_v57 = vpop.f32.mrf.mxu3 }
 0x8a2   :  { %v1876_v21 = vunpack.c.l.b16 %v1666_v27 }
 0x8a7   :  { %v1641_v55 = vpop.f32.mrf.mxu2 }
 0x8a8   :  { %v1667_v18 = vpack.c.bf16 %v1641_v55, %v1641_v55 }
 0x8a9   :  { %v1846_v52 = vpop.f32.mrf.mxu3 }
 0x8aa   :  { %v1877_v32 = vunpack.c.l.b16 %v1667_v18 }
 0x8ac   :  { %v1881_v31 = vpack.c.b16 %v1877_v32, %v1876_v21  ;;  %v3057_v32 = vld [vmem:[%s3834_s2 + $0x2c0] sm:$0xff] }
 0x8ae   :  { %2816 = vmatmul.msk.bf16.gmra.mxu0 %vm1538_vm4, %v1881_v31  ;;  %v3058_v31 = vld [vmem:[%s3834_s2 + $0x2c8] sm:$0xff] }
 0x8b1   :  { %v1849_v28 = vpop.f32.mrf.mxu3 }
 0x8b9   :  { %v1851_v29 = vpop.f32.mrf.mxu3 }
 0x8bb   :  { %v1749_v49 = vpop.f32.mrf.mxu0 }
 0x8bc   :  { %v1835_v62 = vadd.f32 %v1834_v43, %v1749_v49  ;;  %v3059_v43 = vld [vmem:[%s3834_s2 + $0x2d0] sm:$0xff]  ;;  %v3060_v49 = vld [vmem:[%s3834_s2 + $0x2d8] sm:$0xff] }
 0x8c3   :  { %v1751_v30 = vpop.f32.mrf.mxu0 }
 0x8c4   :  { %v1837_v46 = vadd.f32 %v1836_v12, %v1751_v30  ;;  %v3067_v30 = vld [vmem:[%s3834_s2 + $0x310] sm:$0xff] }
 0x8cb   :  { %v1754_v60 = vpop.f32.mrf.mxu0 }
 0x8cc   :  { %v1840_v59 = vadd.f32 %v1839_v33, %v1754_v60  ;;  %v3066_v60 = vld [vmem:[%s3834_s2 + $0x308] sm:$0xff] }
 0x8d3   :  { %v1756_v54 = vpop.f32.mrf.mxu0 }
 0x8d4   :  { %v1842_v6 = vadd.f32 %v1841_v44, %v1756_v54  ;;  %v3065_v54 = vld [vmem:[%s3834_s2 + $0x300] sm:$0xff] }
 0x8db   :  { %v1759_v42 = vpop.f32.mrf.mxu0 }
 0x8dc   :  { %v1845_v17 = vadd.f32 %v1844_v57, %v1759_v42  ;;  %v3064_v42 = vld [vmem:[%s3834_s2 + $0x2f8] sm:$0xff]  ;;  %v3074_v57 = vld [vmem:[%s3834_s2 + $0x348] sm:$0xff] }
 0x8e3   :  { %v1761_v34 = vpop.f32.mrf.mxu0 }
 0x8e4   :  { %v1847_v25 = vadd.f32 %v1846_v52, %v1761_v34  ;;  %v3070_v52 = vld [vmem:[%s3834_s2 + $0x328] sm:$0xff] }
 0x8eb   :  { %v1764_v35 = vpop.f32.mrf.mxu0 }
 0x8ec   :  { %v1850_v1 = vadd.f32 %v1849_v28, %v1764_v35  ;;  %v3063_v35 = vld [vmem:[%s3834_s2 + $0x2f0] sm:$0xff] }
 0x8f3   :  { %v1766_v37 = vpop.f32.mrf.mxu0 }
 0x8f4   :  { %v1852_v24 = vadd.f32 %v1851_v29, %v1766_v37  ;;  %v3062_v37 = vld [vmem:[%s3834_s2 + $0x2e8] sm:$0xff] }
 0x8fb   :  { %v1927_v40 = vpop.f32.mrf.mxu0 }
 0x8fc   :  { %v1947_v15 = vadd.f32 %v1927_v40, %v1835_v62  ;;  %v3068_v62 = vld [vmem:[%s3834_s2 + $0x318] sm:$0xff]  ;;  %v3061_v40 = vld [vmem:[%s3834_s2 + $0x2e0] sm:$0xff] }
 0x8fd   :  { %2115 = vmatpush.bf16.msrb.mxu0 %v3068_v62 }
 0x8fe   :  { %v1956_v36 = vadd.f32 %v1955_v45, %v1947_v15 }
 0x900   :  { %v1964_v0 = vmax.f32 %v1956_v36, 0.0 }
 0x901   :  { %2116 = vmatpush.bf16.msrb.mxu0 %v3067_v30  ;;  %v3085_v30 = vld [vmem:[%s3834_s2 + $0x3a0] sm:$0xff] }
 0x903   :  { %v1929_v9 = vpop.f32.mrf.mxu0 }
 0x904   :  { %v1948_v48 = vadd.f32 %v1929_v9, %v1837_v46 }
 0x905   :  { %2117 = vmatpush.bf16.msrb.mxu0 %v3066_v60 }
 0x906   :  { %v1957_v39 = vadd.f32 %v1955_v45, %v1948_v48 }
 0x908   :  { %v1965_v50 = vmax.f32 %v1957_v39, 0.0 }
 0x909   :  { %2118 = vmatpush.bf16.msrb.mxu0 %v3065_v54 }
 0x90a   :  { %v1972_v63 = vpack.c.bf16 %v1965_v50, %v1964_v0 }
 0x90b   :  { %v1932_v58 = vpop.f32.mrf.mxu0 }
 0x90c   :  { %v1949_v38 = vadd.f32 %v1932_v58, %v1840_v59  ;;  %v3092_v58 = vld [vmem:[%s3834_s2 + $0x3d8] sm:$0xff] }
 0x90d   :  { %2119 = vmatpush.bf16.msrb.mxu0 %v3064_v42  ;;  %2421 = vmatpush.bf16.msrb.mxu1 %v3092_v58  ;;  %v3076_v59 = vld [vmem:[%s3834_s2 + $0x358] sm:$0xff] }
 0x90e   :  { %v1958_v19 = vadd.f32 %v1955_v45, %v1949_v38  ;;  %v3091_v38 = vld [vmem:[%s3834_s2 + $0x3d0] sm:$0xff]  ;;  %2205 = vmatpush.bf16.msrb.mxu2 %v3076_v59 }
 0x910   :  { %v1966_v14 = vmax.f32 %v1958_v19, 0.0 }
 0x911   :  { %2120 = vmatpush.bf16.msrb.mxu0 %v3063_v35  ;;  %2422 = vmatpush.bf16.msrb.mxu1 %v3091_v38 }
 0x913   :  { %v1934_v47 = vpop.f32.mrf.mxu0 }
 0x914   :  { %v1950_v22 = vadd.f32 %v1934_v47, %v1842_v6  ;;  %v3075_v6 = vld [vmem:[%s3834_s2 + $0x350] sm:$0xff] }
 0x915   :  { %2121 = vmatpush.bf16.msrb.mxu0 %v3062_v37  ;;  %2206 = vmatpush.bf16.msrb.mxu2 %v3075_v6  ;;  %v2352_v37 = vperm.slane %v3704_v41, 4 }
 0x916   :  { %v1959_v11 = vadd.f32 %v1955_v45, %v1950_v22 }
 0x918   :  { %v1967_v56 = vmax.f32 %v1959_v11, 0.0 }
 0x919   :  { %2122 = vmatpush.bf16.msrb.mxu0 %v3061_v40  ;;  %2207 = vmatpush.bf16.msrb.mxu2 %v3074_v57 }
 0x91a   :  { %v1973_v5 = vpack.c.bf16 %v1967_v56, %v1966_v14  ;;  %v3073_v14 = vld [vmem:[%s3834_s2 + $0x340] sm:$0xff]  ;;  %v3072_v56 = vld [vmem:[%s3834_s2 + $0x338] sm:$0xff] }
 0x91b   :  { %v1937_v8 = vpop.f32.mrf.mxu0 }
 0x91c   :  { %v1951_v23 = vadd.f32 %v1937_v8, %v1845_v17  ;;  %v3071_v8 = vld [vmem:[%s3834_s2 + $0x330] sm:$0xff]  ;;  %v3069_v17 = vld [vmem:[%s3834_s2 + $0x320] sm:$0xff] }
 0x91d   :  { %2208 = vmatpush.bf16.msrb.mxu2 %v3073_v14 }
 0x91e   :  { %v1960_v16 = vadd.f32 %v1955_v45, %v1951_v23  ;;  %v3080_v23 = vld [vmem:[%s3834_s2 + $0x378] sm:$0xff] }
 0x91f   :  { %2293 = vmatpush.bf16.msra.mxu0 %v3080_v23 }
 0x920   :  { %v1968_v10 = vmax.f32 %v1960_v16, 0.0 }
 0x921   :  { %2245 = vmatpush.bf16.msra.mxu2 %v3072_v56 }
 0x923   :  { %v1939_v26 = vpop.f32.mrf.mxu0 }
 0x924   :  { %v1952_v20 = vadd.f32 %v1939_v26, %v1847_v25  ;;  %v3079_v25 = vld [vmem:[%s3834_s2 + $0x370] sm:$0xff]  ;;  %v3078_v26 = vld [vmem:[%s3834_s2 + $0x368] sm:$0xff] }
 0x925   :  { %2246 = vmatpush.bf16.msra.mxu2 %v3071_v8  ;;  %2294 = vmatpush.bf16.msra.mxu0 %v3079_v25 }
 0x926   :  { %v1961_v7 = vadd.f32 %v1955_v45, %v1952_v20 }
 0x928   :  { %v1969_v13 = vmax.f32 %v1961_v7, 0.0  ;;  %v3084_v7 = vld [vmem:[%s3834_s2 + $0x398] sm:$0xff] }
 0x929   :  { %2247 = vmatpush.bf16.msra.mxu2 %v3070_v52  ;;  %2295 = vmatpush.bf16.msra.mxu0 %v3078_v26 }
 0x92a   :  { %v1974_v61 = vpack.c.bf16 %v1969_v13, %v1968_v10  ;;  %v3077_v10 = vld [vmem:[%s3834_s2 + $0x360] sm:$0xff]  ;;  %v3083_v13 = vld [vmem:[%s3834_s2 + $0x390] sm:$0xff] }
 0x92b   :  { %v1942_v4 = vpop.f32.mrf.mxu0 }
 0x92c   :  { %v1953_v51 = vadd.f32 %v1942_v4, %v1850_v1  ;;  %v3089_v1 = vld [vmem:[%s3834_s2 + $0x3c0] sm:$0xff] }
 0x92d   :  { %2248 = vmatpush.bf16.msra.mxu2 %v3069_v17  ;;  %2296 = vmatpush.bf16.msra.mxu0 %v3077_v10 }
 0x92e   :  { %v1962_v53 = vadd.f32 %v1955_v45, %v1953_v51  ;;  %v3081_v51 = vld [vmem:[%s3834_s2 + $0x380] sm:$0xff] }
 0x930   :  { %v1970_v55 = vmax.f32 %v1962_v53, 0.0 }
 0x933   :  { %v1944_v3 = vpop.f32.mrf.mxu0 }
 0x934   :  { %v1954_v2 = vadd.f32 %v1944_v3, %v1852_v24  ;;  %v3088_v24 = vld [vmem:[%s3834_s2 + $0x3b8] sm:$0xff] }
 0x936   :  { %v1963_v27 = vadd.f32 %v1955_v45, %v1954_v2 }
 0x938   :  { %v1971_v18 = vmax.f32 %v1963_v27, 0.0 }
 0x93a   :  { %v1975_v21 = vpack.c.bf16 %v1971_v18, %v1970_v55 }
 0x93c   :  { %2020 = vmatpush.bf16.msrb.mxu3 %v1975_v21 }
 0x940   :  { %2021 = vmatpush.bf16.msrb.mxu3 %v1974_v61  ;;  %v3082_v61 = vld [vmem:[%s3834_s2 + $0x388] sm:$0xff] }
 0x944   :  { %2022 = vmatpush.bf16.msrb.mxu3 %v1973_v5  ;;  %v3090_v5 = vld [vmem:[%s3834_s2 + $0x3c8] sm:$0xff] }
 0x945   :  { %2423 = vmatpush.bf16.msrb.mxu1 %v3090_v5 }
 0x948   :  { %2023 = vmatpush.bf16.msrb.mxu3 %v1972_v63 }
 0x949   :  { %2424 = vmatpush.bf16.msrb.mxu1 %v3089_v1 }
 0x94b   :  { %2833 = vmatmul.msk.bf16.vlgmr.msrb.gmra.mxu3 %vm1538_vm4, %v3057_v32  ;;  %v3087_v32 = vld [vmem:[%s3834_s2 + $0x3b0] sm:$0xff] }
 0x94d   :  { %2425 = vmatpush.bf16.msrb.mxu1 %v3088_v24 }
 0x951   :  { %2426 = vmatpush.bf16.msrb.mxu1 %v3087_v32 }
 0x95b   :  { %2834 = vmatmul.msk.bf16.gmra.mxu3 %vm1538_vm4, %v3058_v31 }
 0x96b   :  { %2835 = vmatmul.msk.bf16.gmra.mxu3 %vm1538_vm4, %v3059_v43 }
 0x97b   :  { %2836 = vmatmul.msk.bf16.gmra.mxu3 %vm1538_vm4, %v3060_v49  ;;  %v3086_v49 = vld [vmem:[%s3834_s2 + $0x3a8] sm:$0xff] }
 0x97c   :  { %2427 = vmatpush.bf16.msrb.mxu1 %v3086_v49 }
 0x980   :  { %2428 = vmatpush.bf16.msrb.mxu1 %v3085_v30 }
 0x9ce   :  { %v2025_v34 = vpop.f32.mrf.mxu3 }
 0x9d6   :  { %v2027_v12 = vpop.f32.mrf.mxu3 }
 0x9de   :  { %v2030_v15 = vpop.f32.mrf.mxu3 }
 0x9e6   :  { %v2032_v33 = vpop.f32.mrf.mxu3 }
 0x9ee   :  { %v2035_v45 = vpop.f32.mrf.mxu3 }
 0x9ef   :  { %v2045_v9 = vmax.f32 %v2025_v34, %v2035_v45 }
 0x9f6   :  { %v2037_v46 = vpop.f32.mrf.mxu3 }
 0x9f7   :  { %v2046_v36 = vmax.f32 %v2027_v12, %v2037_v46 }
 0x9f9   :  { %v2049_v48 = vpack.c.bf16 %v2046_v36, %v2045_v9  ;;  %v2372_v9 = vperm.slane %v3704_v41, 5 }
 0x9fb   :  { %2123 = vmatmul.bf16.vlgmr.msrb.gmra.mxu0 %v2049_v48 }
 0x9fe   :  { %v2040_v39 = vpop.f32.mrf.mxu3 }
 0x9ff   :  { %v2047_v50 = vmax.f32 %v2030_v15, %v2040_v39 }
 0xa06   :  { %v2042_v0 = vpop.f32.mrf.mxu3 }
 0xa07   :  { %v2048_v44 = vmax.f32 %v2032_v33, %v2042_v0 }
 0xa09   :  { %v2050_v63 = vpack.c.bf16 %v2048_v44, %v2047_v50 }
 0xa0b   :  { %2128 = vmatmul.bf16.gmra.mxu0 %v2050_v63 }
 0xa78   :  { %v2124_v47 = vpop.f32.mrf.mxu0 }
 0xa80   :  { %v2126_v19 = vpop.f32.mrf.mxu0 }
 0xa81   :  { %2140 = vrot.lane.b32.xlu2 %v2126_v19, %s3117_s14 }
 0xa88   :  { %v2129_v22 = vpop.f32.mrf.mxu0 }
 0xa89   :  { %2138 = vrot.lane.b32.xlu2 %v2124_v47, %s3117_s14  ;;  %2142 = vrot.lane.b32.xlu1 %v2129_v22, %s3117_s14 }
 0xa90   :  { %v2131_v11 = vpop.f32.mrf.mxu0 }
 0xa91   :  { %2144 = vrot.lane.b32.xlu0 %v2131_v11, %s3117_s14 }
 0xadb   :  { %v2141_v16 = vpop.permute.xlu2 %2140 }
 0xadc   :  { %v2151_v20 = vmax.f32 %v2126_v19, %v2141_v16 }
 0xade   :  { %v2155_v28 = vpack.c.bf16 %v2151_v20, %v2151_v20 }
 0xae0   :  { %2885 = vmatmul.msk.bf16.vlgmr.msrb.gmra.mxu2 %vm1538_vm4, %v2155_v28 }
 0xae1   :  { %2342 = vmatpush.bf16.msrb.mxu2 %v3084_v7 }
 0xae3   :  { %v2139_v4 = vpop.permute.xlu2 %2138 }
 0xae4   :  { %v2150_v29 = vmax.f32 %v2124_v47, %v2139_v4 }
 0xae5   :  { %2343 = vmatpush.bf16.msrb.mxu2 %v3083_v13 }
 0xae6   :  { %v2154_v3 = vpack.c.bf16 %v2150_v29, %v2150_v29 }
 0xae9   :  { %2344 = vmatpush.bf16.msrb.mxu2 %v3082_v61 }
 0xaed   :  { %2345 = vmatpush.bf16.msrb.mxu2 %v3081_v51 }
 0xaf0   :  { %2902 = vmatmul.msk.bf16.vlgmr.msra.gmra.mxu2 %vm1538_vm4, %v2154_v3 }
 0xafb   :  { %v2143_v53 = vpop.permute.xlu1 %2142 }
 0xafc   :  { %v2152_v2 = vmax.f32 %v2129_v22, %v2143_v53 }
 0xafe   :  { %v2156_v27 = vpack.c.bf16 %v2152_v2, %v2152_v2 }
 0xb00   :  { %2919 = vmatmul.msk.bf16.vlgmr.msra.gmra.mxu0 %vm1538_vm4, %v2156_v27 }
 0xb03   :  { %v2145_v55 = vpop.permute.xlu0 %2144 }
 0xb04   :  { %v2153_v18 = vmax.f32 %v2131_v11, %v2145_v55 }
 0xb06   :  { %v2157_v21 = vpack.c.bf16 %v2153_v18, %v2153_v18 }
 0xb08   :  { %2936 = vmatmul.msk.bf16.vlgmr.msrb.gmra.mxu2 %vm1538_vm4, %v2157_v21 }
 0xb63   :  { %v2210_v31 = vpop.f32.mrf.mxu2 }
 0xb6b   :  { %v2212_v43 = vpop.f32.mrf.mxu2 }
 0xb73   :  { %v2250_v62 = vpop.f32.mrf.mxu2 }
 0xb74   :  { %v2251_v34 = vadd.f32 %v2250_v62, %v2210_v31 }
 0xb7b   :  { %v2252_v60 = vpop.f32.mrf.mxu2 }
 0xb7d   :  { %v2298_v54 = vpop.f32.mrf.mxu0 }
 0xb7e   :  { %v2302_v35 = vadd.f32 %v2298_v54, %v2251_v34 }
 0xb85   :  { %v2300_v42 = vpop.f32.mrf.mxu0 }
 0xb8b   :  { %v2347_v12 = vpop.f32.mrf.mxu2 }
 0xb8c   :  { %v2351_v40 = vadd.f32 %v2347_v12, %v2302_v35 }
 0xb8e   :  { %v2353_v15 = vadd.f32 %v2352_v37, %v2351_v40 }
 0xb90   :  { %v2354_v33 = vmax.f32 %v2353_v15, 0.0 }
 0xb92   :  { %v2355_v45 = vpack.c.bf16 %v2354_v33, %v2354_v33 }
 0xb93   :  { %v2349_v46 = vpop.f32.mrf.mxu2 }
 0xb94   :  { %2429 = vmatmul.bf16.vlgmr.msrb.gmra.mxu1 %v2355_v45 }
 0xc11   :  { %v2430_v36 = vpop.f32.mrf.mxu1 }
 0xc12   :  { %v2431_v48 = vadd.f32 %v2430_v36, %v2372_v9 }
 0xc14   :  { %2434 = vst [vmem:[%s3835_s3] sm:$0xff] %v2431_v48 }
 0xc19   :  { %v2432_v39 = vpop.f32.mrf.mxu1 }

</bundles_post_ra>
